<compile_context>
chip_gen: v7x
topology: tpu7x:2x2x1
jax: 0.10.0
libtpu: 0.0.40
codegen_flags: <defaults>
</compile_context>

<pallas_src>
import functools
import math

import jax
import jax.numpy as jnp
from jax.experimental import pallas as pl
from jax.experimental.pallas import tpu as pltpu

LANE = 128


def _ceil_to(x, m):
    return ((x + m - 1) // m) * m


# ----------------------------- Pallas kernel ------------------------------

def _layer_norm_padded(x, gamma, beta, c_true, eps=1e-5):
    """LayerNorm over the last dim of a lane-padded (rows, Cp) f32 tile.

    Lanes >= c_true of `x` are exactly zero and gamma/beta are zero-padded,
    so the output keeps padded lanes exactly zero.  Uses the (x-mu)^2 form
    (no E[x^2]-mu^2 cancellation); padded lanes of (x-mu) are masked out.
    """
    cp = x.shape[-1]
    inv_c = 1.0 / c_true
    mu = jnp.sum(x, axis=-1, keepdims=True) * inv_c
    xc = x - mu
    if cp != c_true:
        lane = jax.lax.broadcasted_iota(jnp.int32, x.shape, x.ndim - 1)
        xc = jnp.where(lane < c_true, xc, 0.0)
    var = jnp.sum(xc * xc, axis=-1, keepdims=True) * inv_c
    return xc * jax.lax.rsqrt(var + eps) * gamma + beta


def _bytenet_layer_kernel(
    starts_ref,                                   # SMEM (n_layers*k,) int32
    x_ref,                                        # (BT, L, Mp) f32
    ln1_g_ref, ln1_b_ref, w1_ref, b1_ref,
    ln2_g_ref, ln2_b_ref, wc_ref, bc_ref,
    ln3_g_ref, ln3_b_ref, w2_ref, b2_ref,
    o_ref,                                        # (BT, L, Mp) f32
    e_ref,                                        # (BT*L, Mp) f32 residual acc
    hpad_ref,                                     # (BT, rows, Hp) f32 conv pad
    *, kernel_size, d_model, d_h, pad_max,
):
    layer = pl.program_id(1)
    k = kernel_size
    BT, L, Mp = o_ref.shape
    rows, Hp = hpad_ref.shape[1], hpad_ref.shape[2]
    M = BT * L

    @pl.when(layer == 0)
    def _init():
        # Residual accumulator <- embedded input, once per batch tile.
        e_ref[...] = x_ref[...].reshape(M, Mp)
        # Halo rows of the conv scratch are never written by any layer, so
        # zero them once per batch tile ('same' zero padding); the interior
        # rows [pad_max, pad_max+L) are fully rewritten every layer.
        if pad_max > 0:
            hpad_ref[:, 0:pad_max, :] = jnp.zeros(
                (BT, pad_max, Hp), hpad_ref.dtype)
        tail = rows - (pad_max + L)
        if tail > 0:
            hpad_ref[:, pad_max + L:, :] = jnp.zeros(
                (BT, tail, Hp), hpad_ref.dtype)

    e = e_ref[...]                                # (M, Mp) f32

    # sequence1: LayerNorm -> ReLU -> 1x1 conv -> LayerNorm -> ReLU
    h = jnp.maximum(_layer_norm_padded(e, ln1_g_ref[0], ln1_b_ref[0], d_model),
                    0.0)
    h = jnp.dot(h.astype(jnp.bfloat16), w1_ref[0],
                preferred_element_type=jnp.float32) + b1_ref[0]
    h = jnp.maximum(_layer_norm_padded(h, ln2_g_ref[0], ln2_b_ref[0], d_h),
                    0.0)                          # (M, Hp) f32

    # MaskedConv1d (input_mask=None): dilated 'same' conv over length.
    #   out[l] = bc + sum_t h_pad[l + t*dil] @ Wc[t]
    # h is written into the per-sequence zero-halo scratch; each tap is a
    # dynamic row slice (start from the SMEM table) and the k matmuls are
    # accumulated directly -- no (L, k*Hp) concat materialization.
    hpad_ref[:, pad_max:pad_max + L, :] = h.reshape(BT, L, Hp)
    conv = jnp.zeros((M, Hp), jnp.float32)
    for t in range(k):                            # static unroll over taps
        start = starts_ref[layer * k + t]         # = pad_max - pad + t*dil
        tap = hpad_ref[:, pl.ds(start, L), :].reshape(M, Hp)
        conv = conv + jnp.dot(tap.astype(jnp.bfloat16), wc_ref[0, t],
                              preferred_element_type=jnp.float32)
    conv = conv + bc_ref[0]

    # sequence2: LayerNorm -> ReLU -> 1x1 conv, then residual add.
    g = jnp.maximum(_layer_norm_padded(conv, ln3_g_ref[0], ln3_b_ref[0], d_h),
                    0.0)
    g = jnp.dot(g.astype(jnp.bfloat16), w2_ref[0],
                preferred_element_type=jnp.float32) + b2_ref[0]

    e_new = e + g
    e_ref[...] = e_new

    @pl.when(layer == pl.num_programs(1) - 1)
    def _finish():
        o_ref[...] = e_new.reshape(BT, L, Mp)


# ----------------------------- sizing helpers ------------------------------

def _vmem_capacity_bytes():
    try:
        return int(pltpu.get_tpu_info().vmem_capacity_bytes)
    except Exception:                             # best-effort query
        return 64 * 2 ** 20                       # conservative (v7x per-core)


def _resident_bytes(bt, L, Mp, Hp, rows, k):
    # Layer-streamed weights (bf16) + small f32 vectors, double-buffered.
    wl = 2 * (Mp * Hp + k * Hp * Hp + Hp * Mp) + 4 * (3 * Mp + 6 * Hp)
    weights = 2 * wl
    # x + out blocks, double-buffered.
    acts = 2 * 2 * bt * L * Mp * 4
    # Residual accumulator + zero-halo conv scratch.
    scratch = bt * L * Mp * 4 + bt * rows * Hp * 4
    # In-kernel f32 / bf16 temporaries (h, conv, g, taps, casts).
    temps = 8 * bt * L * max(Mp, Hp) * 4
    return weights + acts + scratch + temps


def _pick_batch_tile(N, L, Mp, Hp, rows, k, vmem_cap):
    budget = int(0.65 * vmem_cap)
    bt = max(1, min(N, -(-512 // max(L, 1))))     # aim for >=512 MXU rows
    if N >= 2:
        bt = min(bt, max(1, N // 2))              # keep >=2 tiles (v7x 2 TCs)
    while bt > 1 and _resident_bytes(bt, L, Mp, Hp, rows, k) > budget:
        bt -= 1
    return bt


# ----------------------------- host wrappers ------------------------------

def bytenet_stack(x, prepared):
    """Run the whole ByteNet layer stack in one pallas_call.

    grid = (batch_tiles, n_layers): per-layer weights stream from HBM
    (double-buffered) while the residual stays resident in VMEM across the
    layer axis; the batch-tile axis is "parallel" for megacore sharding.
    """
    st = prepared["stacked"]
    k = prepared["kernel_size"]
    dilations = prepared["dilations"]
    d_model, d_h = prepared["d_model"], prepared["d_h"]
    n_layers = len(dilations)

    N, L, Mp = x.shape
    Hp = st["w1"].shape[2]
    pad_max = max(d * (k - 1) // 2 for d in dilations)
    rows = _ceil_to(max(L + 2 * pad_max, 8), 8)

    vmem_cap = _vmem_capacity_bytes()
    BT = _pick_batch_tile(N, L, Mp, Hp, rows, k, vmem_cap)
    NB = (N + BT - 1) // BT
    if NB * BT != N:
        x = jnp.pad(x, ((0, NB * BT - N), (0, 0), (0, 0)))

    # Per-layer conv tap start rows inside the zero-halo scratch (SMEM table).
    starts = []
    for dil in dilations:
        pad = dil * (k - 1) // 2
        starts.extend(pad_max - pad + t * dil for t in range(k))
    starts = jnp.asarray(starts, jnp.int32)

    kern = functools.partial(_bytenet_layer_kernel, kernel_size=k,
                             d_model=d_model, d_h=d_h, pad_max=pad_max)

    def bmap(b, l, s):            # batch-tile-indexed blocks (x / out)
        return (b, 0, 0)

    def lmap3(b, l, s):           # layer-indexed 3-D weight blocks
        return (l, 0, 0)

    def lmap4(b, l, s):           # layer-indexed 4-D conv weight block
        return (l, 0, 0, 0)

    in_specs = [
        pl.BlockSpec((BT, L, Mp), bmap),                                    # x
        pl.BlockSpec((1, 1, Mp), lmap3), pl.BlockSpec((1, 1, Mp), lmap3),   # ln1 g/b
        pl.BlockSpec((1, Mp, Hp), lmap3), pl.BlockSpec((1, 1, Hp), lmap3),  # w1, b1
        pl.BlockSpec((1, 1, Hp), lmap3), pl.BlockSpec((1, 1, Hp), lmap3),   # ln2 g/b
        pl.BlockSpec((1, k, Hp, Hp), lmap4), pl.BlockSpec((1, 1, Hp), lmap3),  # wc, bc
        pl.BlockSpec((1, 1, Hp), lmap3), pl.BlockSpec((1, 1, Hp), lmap3),   # ln3 g/b
        pl.BlockSpec((1, Hp, Mp), lmap3), pl.BlockSpec((1, 1, Mp), lmap3),  # w2, b2
    ]

    est = _resident_bytes(BT, L, Mp, Hp, rows, k)
    vmem_limit = int(min(vmem_cap - 8 * 2 ** 20,        # headroom for Mosaic
                         max(int(1.5 * est), 32 * 2 ** 20)))
    vmem_limit = max(vmem_limit, est)

    out = pl.pallas_call(
        kern,
        out_shape=jax.ShapeDtypeStruct((NB * BT, L, Mp), jnp.float32),
        grid_spec=pltpu.PrefetchScalarGridSpec(
            num_scalar_prefetch=1,
            grid=(NB, n_layers),
            in_specs=in_specs,
            out_specs=pl.BlockSpec((BT, L, Mp), bmap),
            scratch_shapes=[
                pltpu.VMEM((BT * L, Mp), jnp.float32),    # residual accumulator
                pltpu.VMEM((BT, rows, Hp), jnp.float32),  # zero-halo conv scratch
            ],
        ),
        compiler_params=pltpu.CompilerParams(
            dimension_semantics=("parallel", "arbitrary"),
            vmem_limit_bytes=vmem_limit,
        ),
    )(
        starts, x,
        st["ln1_g"], st["ln1_b"], st["w1"], st["b1"],
        st["ln2_g"], st["ln2_b"], st["wc"], st["bc"],
        st["ln3_g"], st["ln3_b"], st["w2"], st["b2"],
    )
    return out[:N]


def prepare_params(params, dilations, kernel_size):
    """Pad channels to lane-dense multiples of 128, cast matmul weights to
    bf16, fold up_embedder into the embedding table, and stack per-layer
    weights along a leading layer axis for streaming."""
    hi = jax.lax.Precision.HIGHEST
    d_model = params["up_w"].shape[1]
    d_h = params["layers"][0]["w1"].shape[1]
    k = kernel_size
    assert k % 2 == 1, "even kernel_size breaks 'same' length in the original module"
    Mp = _ceil_to(d_model, LANE)
    Hp = _ceil_to(d_h, LANE)

    # up_embedder is a 1x1 conv on an embedding lookup -> fold into the table.
    emb_eff = jnp.einsum("te,em->tm", params["embedding"], params["up_w"],
                         precision=hi) + params["up_b"]
    emb_eff = jnp.pad(emb_eff, ((0, 0), (0, Mp - d_model)))

    def pad_row(a, c):
        return jnp.pad(a, ((0, 0), (0, c - a.shape[1])))

    def pad_mat(a, r, c):
        return jnp.pad(a, ((0, r - a.shape[0]),
                           (0, c - a.shape[1]))).astype(jnp.bfloat16)

    names = ("ln1_g", "ln1_b", "w1", "b1", "ln2_g", "ln2_b",
             "wc", "bc", "ln3_g", "ln3_b", "w2", "b2")
    st = {n: [] for n in names}
    for lp in params["layers"]:
        st["ln1_g"].append(pad_row(lp["ln1_g"], Mp))
        st["ln1_b"].append(pad_row(lp["ln1_b"], Mp))
        st["w1"].append(pad_mat(lp["w1"], Mp, Hp))
        st["b1"].append(pad_row(lp["b1"], Hp))
        st["ln2_g"].append(pad_row(lp["ln2_g"], Hp))
        st["ln2_b"].append(pad_row(lp["ln2_b"], Hp))
        st["wc"].append(jnp.pad(lp["wc"], ((0, 0), (0, Hp - d_h),
                                           (0, Hp - d_h))).astype(jnp.bfloat16))
        st["bc"].append(pad_row(lp["bc"], Hp))
        st["ln3_g"].append(pad_row(lp["ln3_g"], Hp))
        st["ln3_b"].append(pad_row(lp["ln3_b"], Hp))
        st["w2"].append(pad_mat(lp["w2"], Hp, Mp))
        st["b2"].append(pad_row(lp["b2"], Mp))
    stacked = {n: jnp.stack(v, axis=0) for n, v in st.items()}

    return dict(emb_eff=emb_eff, stacked=stacked,
                dilations=tuple(int(d) for d in dilations),
                kernel_size=k, d_model=d_model, d_h=d_h)


def bytenet_forward(prepared, tokens):
    """ByteNet.forward (input_mask=None, dropout=0.0)."""
    e = jnp.take(prepared["emb_eff"], tokens, axis=0)    # (N, L, Mp), glue
    out = bytenet_stack(e, prepared)
    return out[..., :prepared["d_model"]]


# -------------------------- parameter construction -------------------------

def init_params(key, *, n_tokens, d_embedding, d_model, n_layers,
                kernel_size, r, slim=True):
    log2r = int(math.log2(r)) + 1
    dilations = [2 ** (n % log2r) for n in range(n_layers)]
    d_h = d_model // 2 if slim else d_model

    keys = jax.random.split(key, 2 + n_layers)
    params = {
        "embedding": 0.1 * jax.random.normal(
            keys[0], (n_tokens, d_embedding), jnp.float32),
        "up_w": 0.1 * jax.random.normal(
            keys[1], (d_embedding, d_model), jnp.float32),
        "up_b": jnp.zeros((1, d_model), jnp.float32),
    }
    layers = []
    for i in range(n_layers):
        lk = jax.random.split(keys[2 + i], 4)
        layers.append({
            "ln1_g": jnp.ones((1, d_model), jnp.float32),
            "ln1_b": jnp.zeros((1, d_model), jnp.float32),
            "w1": 0.1 * jax.random.normal(lk[0], (d_model, d_h), jnp.float32),
            "b1": 0.01 * jax.random.normal(lk[1], (1, d_h), jnp.float32),
            "ln2_g": jnp.ones((1, d_h), jnp.float32),
            "ln2_b": jnp.zeros((1, d_h), jnp.float32),
            # wc[t, c_in, c_out]  <->  PyTorch conv weight[c_out, c_in, t]
            "wc": 0.1 * jax.random.normal(
                lk[2], (kernel_size, d_h, d_h), jnp.float32),
            "bc": jnp.zeros((1, d_h), jnp.float32),
            "ln3_g": jnp.ones((1, d_h), jnp.float32),
            "ln3_b": jnp.zeros((1, d_h), jnp.float32),
            "w2": 0.1 * jax.random.normal(lk[3], (d_h, d_model), jnp.float32),
            "b2": jnp.zeros((1, d_model), jnp.float32),
        })
    params["layers"] = layers
    return params, dilations


# ------------------------------ pure-JAX refs ------------------------------

def _ref_ln(x, g, b, eps=1e-5):
    mu = x.mean(-1, keepdims=True)
    var = ((x - mu) ** 2).mean(-1, keepdims=True)
    return (x - mu) / jnp.sqrt(var + eps) * g + b


def ref_forward(params, dilations, tokens, kernel_size,
                matmul_dtype=jnp.float32):
    """Reference. matmul_dtype=bf16 mirrors the kernel's MXU numerics."""
    hi = jax.lax.Precision.HIGHEST

    def mm(a, b):
        return jnp.einsum("nlc,cd->nld", a.astype(matmul_dtype),
                          b.astype(matmul_dtype), precision=hi,
                          preferred_element_type=jnp.float32)

    e = params["embedding"][tokens]
    e = jnp.einsum("nld,dm->nlm", e, params["up_w"],
                   precision=hi) + params["up_b"]          # up-embed stays f32
    L = e.shape[1]
    for p, dil in zip(params["layers"], dilations):
        h = jnp.maximum(_ref_ln(e, p["ln1_g"], p["ln1_b"]), 0.0)
        h = mm(h, p["w1"]) + p["b1"]
        h = jnp.maximum(_ref_ln(h, p["ln2_g"], p["ln2_b"]), 0.0)
        pad = dil * (kernel_size - 1) // 2
        hp = jnp.pad(h, ((0, 0), (pad, pad), (0, 0)))
        conv = jnp.zeros(h.shape, jnp.float32) + p["bc"]
        for t in range(kernel_size):
            conv = conv + mm(hp[:, t * dil:t * dil + L, :], p["wc"][t])
        g = jnp.maximum(_ref_ln(conv, p["ln3_g"], p["ln3_b"]), 0.0)
        g = mm(g, p["w2"]) + p["b2"]
        e = e + g
    return e


# ---------------------------------- main -----------------------------------

if __name__ == "__main__":
    n_tokens, d_embedding, d_model = 20, 8, 32
    n_layers, kernel_size, r = 4, 5, 4
    N, L = 4, 16

    params, dilations = init_params(
        jax.random.PRNGKey(0),
        n_tokens=n_tokens, d_embedding=d_embedding, d_model=d_model,
        n_layers=n_layers, kernel_size=kernel_size, r=r, slim=True)

    tokens = jax.random.randint(
        jax.random.PRNGKey(0), (N, L), minval=0, maxval=n_tokens)

    prepared = prepare_params(params, dilations, kernel_size)
    out = bytenet_forward(prepared, tokens)
    out = jax.block_until_ready(out)

    assert out.shape == (N, L, d_model), out.shape
    assert bool(jnp.all(jnp.isfinite(out)))

    # Tight check against a reference with identical MXU numerics (bf16
    # operands, f32 accumulation) -> validates kernel logic.
    ref_bf16 = ref_forward(params, dilations, tokens, kernel_size,
                           matmul_dtype=jnp.bfloat16)
    err_tight = float(jnp.max(jnp.abs(out - ref_bf16)))
    assert jnp.allclose(out, ref_bf16, rtol=2e-2, atol=2e-2), err_tight

    # Looser sanity check against the full-f32 PyTorch-semantics reference
    # (slack covers the deliberate bf16 operand rounding).
    ref_f32 = ref_forward(params, dilations, tokens, kernel_size,
                          matmul_dtype=jnp.float32)
    err_f32 = float(jnp.max(jnp.abs(out - ref_f32)))
    assert jnp.allclose(out, ref_f32, rtol=5e-2, atol=8e-2), err_f32

    print("KERNEL_OK")
</pallas_src>

<mosaic_0001>
module attributes {stable_mosaic.version = 11 : i64} {
  func.func @_bytenet_layer_kernel(%arg0: i32, %arg1: i32, %arg2: memref<20xi32, #tpu.memory_space<smem>>, %arg3: memref<2x16x128xf32, #tpu.memory_space<vmem>>, %arg4: memref<1x1x128xf32, #tpu.memory_space<vmem>>, %arg5: memref<1x1x128xf32, #tpu.memory_space<vmem>>, %arg6: memref<1x128x128xbf16, #tpu.memory_space<vmem>>, %arg7: memref<1x1x128xf32, #tpu.memory_space<vmem>>, %arg8: memref<1x1x128xf32, #tpu.memory_space<vmem>>, %arg9: memref<1x1x128xf32, #tpu.memory_space<vmem>>, %arg10: memref<1x5x128x128xbf16, #tpu.memory_space<vmem>>, %arg11: memref<1x1x128xf32, #tpu.memory_space<vmem>>, %arg12: memref<1x1x128xf32, #tpu.memory_space<vmem>>, %arg13: memref<1x1x128xf32, #tpu.memory_space<vmem>>, %arg14: memref<1x128x128xbf16, #tpu.memory_space<vmem>>, %arg15: memref<1x1x128xf32, #tpu.memory_space<vmem>>, %arg16: memref<2x16x128xf32, #tpu.memory_space<vmem>>, %arg17: memref<32x128xf32, #tpu.memory_space<vmem>>, %arg18: memref<2x32x128xf32, #tpu.memory_space<vmem>>) attributes {dimension_semantics = [#tpu.dimension_semantics<parallel>, #tpu.dimension_semantics<arbitrary>], iteration_bounds = array<i64: 2, 4>, scalar_prefetch = 1 : i64, scratch_operands = 2 : i64, tpu.core_type = #tpu.core_type<tc>, window_params = [{transform_indices = @transform_0, window_bounds = array<i64: 2, 16, 128>}, {transform_indices = @transform_1, window_bounds = array<i64: 1, 1, 128>}, {transform_indices = @transform_2, window_bounds = array<i64: 1, 1, 128>}, {transform_indices = @transform_3, window_bounds = array<i64: 1, 128, 128>}, {transform_indices = @transform_4, window_bounds = array<i64: 1, 1, 128>}, {transform_indices = @transform_5, window_bounds = array<i64: 1, 1, 128>}, {transform_indices = @transform_6, window_bounds = array<i64: 1, 1, 128>}, {transform_indices = @transform_7, window_bounds = array<i64: 1, 5, 128, 128>}, {transform_indices = @transform_8, window_bounds = array<i64: 1, 1, 128>}, {transform_indices = @transform_9, window_bounds = array<i64: 1, 1, 128>}, {transform_indices = @transform_10, window_bounds = array<i64: 1, 1, 128>}, {transform_indices = @transform_11, window_bounds = array<i64: 1, 128, 128>}, {transform_indices = @transform_12, window_bounds = array<i64: 1, 1, 128>}, {transform_indices = @transform_13, window_bounds = array<i64: 2, 16, 128>}]} {
    %c0_i32 = arith.constant 0 : i32
    %0 = arith.cmpi eq, %arg1, %c0_i32 : i32
    %1 = arith.extui %0 : i1 to i32
    %c0_i32_0 = arith.constant 0 : i32
    %2 = arith.cmpi ne, %1, %c0_i32_0 : i32
    scf.if %2 {
      %c0_101 = arith.constant 0 : index
      %c0_102 = arith.constant 0 : index
      %c0_103 = arith.constant 0 : index
      %185 = vector.load %arg3[%c0_101, %c0_102, %c0_103] : memref<2x16x128xf32, #tpu.memory_space<vmem>>, vector<2x16x128xf32>
      %186 = vector.shape_cast %185 : vector<2x16x128xf32> to vector<32x128xf32>
      %c0_104 = arith.constant 0 : index
      %c0_105 = arith.constant 0 : index
      %187 = vector.load %arg17[%c0_104, %c0_105] : memref<32x128xf32, #tpu.memory_space<vmem>>, vector<32x128xf32>
      tpu.vector_store %arg17[%c0_104, %c0_105], %186 {strides = array<i32>} : memref<32x128xf32, #tpu.memory_space<vmem>>, vector<32x128xf32>,
      %cst_106 = arith.constant 0.000000e+00 : f32
      %188 = vector.broadcast %cst_106 : f32 to vector<2x8x128xf32>
      %c0_107 = arith.constant 0 : index
      %c0_108 = arith.constant 0 : index
      %c0_109 = arith.constant 0 : index
      %189 = vector.load %arg18[%c0_107, %c0_108, %c0_109] : memref<2x32x128xf32, #tpu.memory_space<vmem>>, vector<2x8x128xf32>
      tpu.vector_store %arg18[%c0_107, %c0_108, %c0_109], %188 {strides = array<i32>} : memref<2x32x128xf32, #tpu.memory_space<vmem>>, vector<2x8x128xf32>,
      %cst_110 = arith.constant 0.000000e+00 : f32
      %190 = vector.broadcast %cst_110 : f32 to vector<2x8x128xf32>
      %c0_111 = arith.constant 0 : index
      %c24 = arith.constant 24 : index
      %c0_112 = arith.constant 0 : index
      %191 = vector.load %arg18[%c0_111, %c24, %c0_112] : memref<2x32x128xf32, #tpu.memory_space<vmem>>, vector<2x8x128xf32>
      tpu.vector_store %arg18[%c0_111, %c24, %c0_112], %190 {strides = array<i32>} : memref<2x32x128xf32, #tpu.memory_space<vmem>>, vector<2x8x128xf32>,
    } else {
    }
    %c0 = arith.constant 0 : index
    %c0_1 = arith.constant 0 : index
    %3 = vector.load %arg17[%c0, %c0_1] : memref<32x128xf32, #tpu.memory_space<vmem>>, vector<32x128xf32>
    %c0_2 = arith.constant 0 : index
    %c0_3 = arith.constant 0 : index
    %c0_4 = arith.constant 0 : index
    %4 = vector.load %arg4[%c0_2, %c0_3, %c0_4] : memref<1x1x128xf32, #tpu.memory_space<vmem>>, vector<1x1x128xf32>
    %5 = vector.shape_cast %4 : vector<1x1x128xf32> to vector<1x128xf32>
    %c0_5 = arith.constant 0 : index
    %c0_6 = arith.constant 0 : index
    %c0_7 = arith.constant 0 : index
    %6 = vector.load %arg5[%c0_5, %c0_6, %c0_7] : memref<1x1x128xf32, #tpu.memory_space<vmem>>, vector<1x1x128xf32>
    %7 = vector.shape_cast %6 : vector<1x1x128xf32> to vector<1x128xf32>
    %cst = arith.constant dense<0.000000e+00> : vector<32xf32>
    %8 = vector.multi_reduction <add>, %3, %cst [1] : vector<32x128xf32> to vector<32xf32>
    %9 = vector.shape_cast %8 : vector<32xf32> to vector<32x1xf32>
    %cst_8 = arith.constant 3.125000e-02 : f32
    %10 = vector.broadcast %cst_8 : f32 to vector<32x1xf32>
    %11 = arith.mulf %9, %10 : vector<32x1xf32>
    %12 = vector.broadcast %11 : vector<32x1xf32> to vector<32x128xf32>
    %13 = arith.subf %3, %12 : vector<32x128xf32>
    %14 = tpu.iota {dimensions = array<i32: 1>} : vector<32x128xi32>
    %c32_i32 = arith.constant 32 : i32
    %15 = vector.broadcast %c32_i32 : i32 to vector<32x128xi32>
    %16 = arith.cmpi slt, %14, %15 : vector<32x128xi32>
    %cst_9 = arith.constant 0.000000e+00 : f32
    %17 = vector.broadcast %cst_9 : f32 to vector<32x128xf32>
    %18 = arith.select %16, %13, %17 : vector<32x128xi1>, vector<32x128xf32>
    %19 = arith.mulf %18, %18 : vector<32x128xf32>
    %cst_10 = arith.constant dense<0.000000e+00> : vector<32xf32>
    %20 = vector.multi_reduction <add>, %19, %cst_10 [1] : vector<32x128xf32> to vector<32xf32>
    %21 = vector.shape_cast %20 : vector<32xf32> to vector<32x1xf32>
    %cst_11 = arith.constant 3.125000e-02 : f32
    %22 = vector.broadcast %cst_11 : f32 to vector<32x1xf32>
    %23 = arith.mulf %21, %22 : vector<32x1xf32>
    %cst_12 = arith.constant 9.99999974E-6 : f32
    %24 = vector.broadcast %cst_12 : f32 to vector<32x1xf32>
    %25 = arith.addf %23, %24 : vector<32x1xf32>
    %26 = math.rsqrt %25 : vector<32x1xf32>
    %27 = vector.broadcast %26 : vector<32x1xf32> to vector<32x128xf32>
    %28 = arith.mulf %18, %27 : vector<32x128xf32>
    %29 = vector.broadcast %5 : vector<1x128xf32> to vector<32x128xf32>
    %30 = arith.mulf %28, %29 : vector<32x128xf32>
    %31 = vector.broadcast %7 : vector<1x128xf32> to vector<32x128xf32>
    %32 = arith.addf %30, %31 : vector<32x128xf32>
    %cst_13 = arith.constant 0.000000e+00 : f32
    %33 = vector.broadcast %cst_13 : f32 to vector<32x128xf32>
    %34 = arith.maximumf %32, %33 : vector<32x128xf32>
    %35 = arith.truncf %34 : vector<32x128xf32> to vector<32x128xbf16>
    %c0_14 = arith.constant 0 : index
    %c0_15 = arith.constant 0 : index
    %c0_16 = arith.constant 0 : index
    %36 = vector.load %arg6[%c0_14, %c0_15, %c0_16] : memref<1x128x128xbf16, #tpu.memory_space<vmem>>, vector<1x128x128xbf16>
    %37 = vector.shape_cast %36 : vector<1x128x128xbf16> to vector<128x128xbf16>
    %cst_17 = arith.constant dense<0.000000e+00> : vector<32x128xf32>
    %38 = tpu.matmul %35, %37, %cst_17 {dimension_numbers = #tpu.dot_dimension_numbers<[1], [0], [0], [1], [0, 0, 1, 1], [], []>} : vector<32x128xbf16>, vector<128x128xbf16>, vector<32x128xf32> -> vector<32x128xf32>
    %c0_18 = arith.constant 0 : index
    %c0_19 = arith.constant 0 : index
    %c0_20 = arith.constant 0 : index
    %39 = vector.load %arg7[%c0_18, %c0_19, %c0_20] : memref<1x1x128xf32, #tpu.memory_space<vmem>>, vector<1x1x128xf32>
    %40 = vector.shape_cast %39 : vector<1x1x128xf32> to vector<1x128xf32>
    %41 = vector.broadcast %40 : vector<1x128xf32> to vector<32x128xf32>
    %42 = arith.addf %38, %41 : vector<32x128xf32>
    %c0_21 = arith.constant 0 : index
    %c0_22 = arith.constant 0 : index
    %c0_23 = arith.constant 0 : index
    %43 = vector.load %arg8[%c0_21, %c0_22, %c0_23] : memref<1x1x128xf32, #tpu.memory_space<vmem>>, vector<1x1x128xf32>
    %44 = vector.shape_cast %43 : vector<1x1x128xf32> to vector<1x128xf32>
    %c0_24 = arith.constant 0 : index
    %c0_25 = arith.constant 0 : index
    %c0_26 = arith.constant 0 : index
    %45 = vector.load %arg9[%c0_24, %c0_25, %c0_26] : memref<1x1x128xf32, #tpu.memory_space<vmem>>, vector<1x1x128xf32>
    %46 = vector.shape_cast %45 : vector<1x1x128xf32> to vector<1x128xf32>
    %cst_27 = arith.constant dense<0.000000e+00> : vector<32xf32>
    %47 = vector.multi_reduction <add>, %42, %cst_27 [1] : vector<32x128xf32> to vector<32xf32>
    %48 = vector.shape_cast %47 : vector<32xf32> to vector<32x1xf32>
    %cst_28 = arith.constant 6.250000e-02 : f32
    %49 = vector.broadcast %cst_28 : f32 to vector<32x1xf32>
    %50 = arith.mulf %48, %49 : vector<32x1xf32>
    %51 = vector.broadcast %50 : vector<32x1xf32> to vector<32x128xf32>
    %52 = arith.subf %42, %51 : vector<32x128xf32>
    %53 = tpu.iota {dimensions = array<i32: 1>} : vector<32x128xi32>
    %c16_i32 = arith.constant 16 : i32
    %54 = vector.broadcast %c16_i32 : i32 to vector<32x128xi32>
    %55 = arith.cmpi slt, %53, %54 : vector<32x128xi32>
    %cst_29 = arith.constant 0.000000e+00 : f32
    %56 = vector.broadcast %cst_29 : f32 to vector<32x128xf32>
    %57 = arith.select %55, %52, %56 : vector<32x128xi1>, vector<32x128xf32>
    %58 = arith.mulf %57, %57 : vector<32x128xf32>
    %cst_30 = arith.constant dense<0.000000e+00> : vector<32xf32>
    %59 = vector.multi_reduction <add>, %58, %cst_30 [1] : vector<32x128xf32> to vector<32xf32>
    %60 = vector.shape_cast %59 : vector<32xf32> to vector<32x1xf32>
    %cst_31 = arith.constant 6.250000e-02 : f32
    %61 = vector.broadcast %cst_31 : f32 to vector<32x1xf32>
    %62 = arith.mulf %60, %61 : vector<32x1xf32>
    %cst_32 = arith.constant 9.99999974E-6 : f32
    %63 = vector.broadcast %cst_32 : f32 to vector<32x1xf32>
    %64 = arith.addf %62, %63 : vector<32x1xf32>
    %65 = math.rsqrt %64 : vector<32x1xf32>
    %66 = vector.broadcast %65 : vector<32x1xf32> to vector<32x128xf32>
    %67 = arith.mulf %57, %66 : vector<32x128xf32>
    %68 = vector.broadcast %44 : vector<1x128xf32> to vector<32x128xf32>
    %69 = arith.mulf %67, %68 : vector<32x128xf32>
    %70 = vector.broadcast %46 : vector<1x128xf32> to vector<32x128xf32>
    %71 = arith.addf %69, %70 : vector<32x128xf32>
    %cst_33 = arith.constant 0.000000e+00 : f32
    %72 = vector.broadcast %cst_33 : f32 to vector<32x128xf32>
    %73 = arith.maximumf %71, %72 : vector<32x128xf32>
    %74 = vector.shape_cast %73 : vector<32x128xf32> to vector<2x16x128xf32>
    %c0_34 = arith.constant 0 : index
    %c8 = arith.constant 8 : index
    %c0_35 = arith.constant 0 : index
    %75 = vector.load %arg18[%c0_34, %c8, %c0_35] : memref<2x32x128xf32, #tpu.memory_space<vmem>>, vector<2x16x128xf32>
    tpu.vector_store %arg18[%c0_34, %c8, %c0_35], %74 {strides = array<i32>} : memref<2x32x128xf32, #tpu.memory_space<vmem>>, vector<2x16x128xf32>,
    %cst_36 = arith.constant 0.000000e+00 : f32
    %76 = vector.broadcast %cst_36 : f32 to vector<32x128xf32>
    %c5_i32 = arith.constant 5 : i32
    %77 = arith.muli %arg1, %c5_i32 : i32
    %c0_i32_37 = arith.constant 0 : i32
    %78 = arith.addi %77, %c0_i32_37 : i32
    %79 = arith.index_cast %78 : i32 to index
    %80 = memref.load %arg2[%79] : memref<20xi32, #tpu.memory_space<smem>>
    %c0_38 = arith.constant 0 : index
    %81 = arith.index_cast %80 : i32 to index
    %c0_39 = arith.constant 0 : index
    %82 = vector.load %arg18[%c0_38, %81, %c0_39] : memref<2x32x128xf32, #tpu.memory_space<vmem>>, vector<2x16x128xf32>
    %83 = vector.shape_cast %82 : vector<2x16x128xf32> to vector<32x128xf32>
    %84 = arith.truncf %83 : vector<32x128xf32> to vector<32x128xbf16>
    %c0_40 = arith.constant 0 : index
    %c0_41 = arith.constant 0 : index
    %c0_42 = arith.constant 0 : index
    %c0_43 = arith.constant 0 : index
    %85 = vector.load %arg10[%c0_40, %c0_41, %c0_42, %c0_43] : memref<1x5x128x128xbf16, #tpu.memory_space<vmem>>, vector<1x1x128x128xbf16>
    %86 = vector.shape_cast %85 : vector<1x1x128x128xbf16> to vector<128x128xbf16>
    %cst_44 = arith.constant dense<0.000000e+00> : vector<32x128xf32>
    %87 = tpu.matmul %84, %86, %cst_44 {dimension_numbers = #tpu.dot_dimension_numbers<[1], [0], [0], [1], [0, 0, 1, 1], [], []>} : vector<32x128xbf16>, vector<128x128xbf16>, vector<32x128xf32> -> vector<32x128xf32>
    %88 = arith.addf %76, %87 : vector<32x128xf32>
    %c5_i32_45 = arith.constant 5 : i32
    %89 = arith.muli %arg1, %c5_i32_45 : i32
    %c1_i32 = arith.constant 1 : i32
    %90 = arith.addi %89, %c1_i32 : i32
    %91 = arith.index_cast %90 : i32 to index
    %92 = memref.load %arg2[%91] : memref<20xi32, #tpu.memory_space<smem>>
    %c0_46 = arith.constant 0 : index
    %93 = arith.index_cast %92 : i32 to index
    %c0_47 = arith.constant 0 : index
    %94 = vector.load %arg18[%c0_46, %93, %c0_47] : memref<2x32x128xf32, #tpu.memory_space<vmem>>, vector<2x16x128xf32>
    %95 = vector.shape_cast %94 : vector<2x16x128xf32> to vector<32x128xf32>
    %96 = arith.truncf %95 : vector<32x128xf32> to vector<32x128xbf16>
    %c0_48 = arith.constant 0 : index
    %c1 = arith.constant 1 : index
    %c0_49 = arith.constant 0 : index
    %c0_50 = arith.constant 0 : index
    %97 = vector.load %arg10[%c0_48, %c1, %c0_49, %c0_50] : memref<1x5x128x128xbf16, #tpu.memory_space<vmem>>, vector<1x1x128x128xbf16>
    %98 = vector.shape_cast %97 : vector<1x1x128x128xbf16> to vector<128x128xbf16>
    %cst_51 = arith.constant dense<0.000000e+00> : vector<32x128xf32>
    %99 = tpu.matmul %96, %98, %cst_51 {dimension_numbers = #tpu.dot_dimension_numbers<[1], [0], [0], [1], [0, 0, 1, 1], [], []>} : vector<32x128xbf16>, vector<128x128xbf16>, vector<32x128xf32> -> vector<32x128xf32>
    %100 = arith.addf %88, %99 : vector<32x128xf32>
    %c5_i32_52 = arith.constant 5 : i32
    %101 = arith.muli %arg1, %c5_i32_52 : i32
    %c2_i32 = arith.constant 2 : i32
    %102 = arith.addi %101, %c2_i32 : i32
    %103 = arith.index_cast %102 : i32 to index
    %104 = memref.load %arg2[%103] : memref<20xi32, #tpu.memory_space<smem>>
    %c0_53 = arith.constant 0 : index
    %105 = arith.index_cast %104 : i32 to index
    %c0_54 = arith.constant 0 : index
    %106 = vector.load %arg18[%c0_53, %105, %c0_54] : memref<2x32x128xf32, #tpu.memory_space<vmem>>, vector<2x16x128xf32>
    %107 = vector.shape_cast %106 : vector<2x16x128xf32> to vector<32x128xf32>
    %108 = arith.truncf %107 : vector<32x128xf32> to vector<32x128xbf16>
    %c0_55 = arith.constant 0 : index
    %c2 = arith.constant 2 : index
    %c0_56 = arith.constant 0 : index
    %c0_57 = arith.constant 0 : index
    %109 = vector.load %arg10[%c0_55, %c2, %c0_56, %c0_57] : memref<1x5x128x128xbf16, #tpu.memory_space<vmem>>, vector<1x1x128x128xbf16>
    %110 = vector.shape_cast %109 : vector<1x1x128x128xbf16> to vector<128x128xbf16>
    %cst_58 = arith.constant dense<0.000000e+00> : vector<32x128xf32>
    %111 = tpu.matmul %108, %110, %cst_58 {dimension_numbers = #tpu.dot_dimension_numbers<[1], [0], [0], [1], [0, 0, 1, 1], [], []>} : vector<32x128xbf16>, vector<128x128xbf16>, vector<32x128xf32> -> vector<32x128xf32>
    %112 = arith.addf %100, %111 : vector<32x128xf32>
    %c5_i32_59 = arith.constant 5 : i32
    %113 = arith.muli %arg1, %c5_i32_59 : i32
    %c3_i32 = arith.constant 3 : i32
    %114 = arith.addi %113, %c3_i32 : i32
    %115 = arith.index_cast %114 : i32 to index
    %116 = memref.load %arg2[%115] : memref<20xi32, #tpu.memory_space<smem>>
    %c0_60 = arith.constant 0 : index
    %117 = arith.index_cast %116 : i32 to index
    %c0_61 = arith.constant 0 : index
    %118 = vector.load %arg18[%c0_60, %117, %c0_61] : memref<2x32x128xf32, #tpu.memory_space<vmem>>, vector<2x16x128xf32>
    %119 = vector.shape_cast %118 : vector<2x16x128xf32> to vector<32x128xf32>
    %120 = arith.truncf %119 : vector<32x128xf32> to vector<32x128xbf16>
    %c0_62 = arith.constant 0 : index
    %c3 = arith.constant 3 : index
    %c0_63 = arith.constant 0 : index
    %c0_64 = arith.constant 0 : index
    %121 = vector.load %arg10[%c0_62, %c3, %c0_63, %c0_64] : memref<1x5x128x128xbf16, #tpu.memory_space<vmem>>, vector<1x1x128x128xbf16>
    %122 = vector.shape_cast %121 : vector<1x1x128x128xbf16> to vector<128x128xbf16>
    %cst_65 = arith.constant dense<0.000000e+00> : vector<32x128xf32>
    %123 = tpu.matmul %120, %122, %cst_65 {dimension_numbers = #tpu.dot_dimension_numbers<[1], [0], [0], [1], [0, 0, 1, 1], [], []>} : vector<32x128xbf16>, vector<128x128xbf16>, vector<32x128xf32> -> vector<32x128xf32>
    %124 = arith.addf %112, %123 : vector<32x128xf32>
    %c5_i32_66 = arith.constant 5 : i32
    %125 = arith.muli %arg1, %c5_i32_66 : i32
    %c4_i32 = arith.constant 4 : i32
    %126 = arith.addi %125, %c4_i32 : i32
    %127 = arith.index_cast %126 : i32 to index
    %128 = memref.load %arg2[%127] : memref<20xi32, #tpu.memory_space<smem>>
    %c0_67 = arith.constant 0 : index
    %129 = arith.index_cast %128 : i32 to index
    %c0_68 = arith.constant 0 : index
    %130 = vector.load %arg18[%c0_67, %129, %c0_68] : memref<2x32x128xf32, #tpu.memory_space<vmem>>, vector<2x16x128xf32>
    %131 = vector.shape_cast %130 : vector<2x16x128xf32> to vector<32x128xf32>
    %132 = arith.truncf %131 : vector<32x128xf32> to vector<32x128xbf16>
    %c0_69 = arith.constant 0 : index
    %c4 = arith.constant 4 : index
    %c0_70 = arith.constant 0 : index
    %c0_71 = arith.constant 0 : index
    %133 = vector.load %arg10[%c0_69, %c4, %c0_70, %c0_71] : memref<1x5x128x128xbf16, #tpu.memory_space<vmem>>, vector<1x1x128x128xbf16>
    %134 = vector.shape_cast %133 : vector<1x1x128x128xbf16> to vector<128x128xbf16>
    %cst_72 = arith.constant dense<0.000000e+00> : vector<32x128xf32>
    %135 = tpu.matmul %132, %134, %cst_72 {dimension_numbers = #tpu.dot_dimension_numbers<[1], [0], [0], [1], [0, 0, 1, 1], [], []>} : vector<32x128xbf16>, vector<128x128xbf16>, vector<32x128xf32> -> vector<32x128xf32>
    %136 = arith.addf %124, %135 : vector<32x128xf32>
    %c0_73 = arith.constant 0 : index
    %c0_74 = arith.constant 0 : index
    %c0_75 = arith.constant 0 : index
    %137 = vector.load %arg11[%c0_73, %c0_74, %c0_75] : memref<1x1x128xf32, #tpu.memory_space<vmem>>, vector<1x1x128xf32>
    %138 = vector.shape_cast %137 : vector<1x1x128xf32> to vector<1x128xf32>
    %139 = vector.broadcast %138 : vector<1x128xf32> to vector<32x128xf32>
    %140 = arith.addf %136, %139 : vector<32x128xf32>
    %c0_76 = arith.constant 0 : index
    %c0_77 = arith.constant 0 : index
    %c0_78 = arith.constant 0 : index
    %141 = vector.load %arg12[%c0_76, %c0_77, %c0_78] : memref<1x1x128xf32, #tpu.memory_space<vmem>>, vector<1x1x128xf32>
    %142 = vector.shape_cast %141 : vector<1x1x128xf32> to vector<1x128xf32>
    %c0_79 = arith.constant 0 : index
    %c0_80 = arith.constant 0 : index
    %c0_81 = arith.constant 0 : index
    %143 = vector.load %arg13[%c0_79, %c0_80, %c0_81] : memref<1x1x128xf32, #tpu.memory_space<vmem>>, vector<1x1x128xf32>
    %144 = vector.shape_cast %143 : vector<1x1x128xf32> to vector<1x128xf32>
    %cst_82 = arith.constant dense<0.000000e+00> : vector<32xf32>
    %145 = vector.multi_reduction <add>, %140, %cst_82 [1] : vector<32x128xf32> to vector<32xf32>
    %146 = vector.shape_cast %145 : vector<32xf32> to vector<32x1xf32>
    %cst_83 = arith.constant 6.250000e-02 : f32
    %147 = vector.broadcast %cst_83 : f32 to vector<32x1xf32>
    %148 = arith.mulf %146, %147 : vector<32x1xf32>
    %149 = vector.broadcast %148 : vector<32x1xf32> to vector<32x128xf32>
    %150 = arith.subf %140, %149 : vector<32x128xf32>
    %151 = tpu.iota {dimensions = array<i32: 1>} : vector<32x128xi32>
    %c16_i32_84 = arith.constant 16 : i32
    %152 = vector.broadcast %c16_i32_84 : i32 to vector<32x128xi32>
    %153 = arith.cmpi slt, %151, %152 : vector<32x128xi32>
    %cst_85 = arith.constant 0.000000e+00 : f32
    %154 = vector.broadcast %cst_85 : f32 to vector<32x128xf32>
    %155 = arith.select %153, %150, %154 : vector<32x128xi1>, vector<32x128xf32>
    %156 = arith.mulf %155, %155 : vector<32x128xf32>
    %cst_86 = arith.constant dense<0.000000e+00> : vector<32xf32>
    %157 = vector.multi_reduction <add>, %156, %cst_86 [1] : vector<32x128xf32> to vector<32xf32>
    %158 = vector.shape_cast %157 : vector<32xf32> to vector<32x1xf32>
    %cst_87 = arith.constant 6.250000e-02 : f32
    %159 = vector.broadcast %cst_87 : f32 to vector<32x1xf32>
    %160 = arith.mulf %158, %159 : vector<32x1xf32>
    %cst_88 = arith.constant 9.99999974E-6 : f32
    %161 = vector.broadcast %cst_88 : f32 to vector<32x1xf32>
    %162 = arith.addf %160, %161 : vector<32x1xf32>
    %163 = math.rsqrt %162 : vector<32x1xf32>
    %164 = vector.broadcast %163 : vector<32x1xf32> to vector<32x128xf32>
    %165 = arith.mulf %155, %164 : vector<32x128xf32>
    %166 = vector.broadcast %142 : vector<1x128xf32> to vector<32x128xf32>
    %167 = arith.mulf %165, %166 : vector<32x128xf32>
    %168 = vector.broadcast %144 : vector<1x128xf32> to vector<32x128xf32>
    %169 = arith.addf %167, %168 : vector<32x128xf32>
    %cst_89 = arith.constant 0.000000e+00 : f32
    %170 = vector.broadcast %cst_89 : f32 to vector<32x128xf32>
    %171 = arith.maximumf %169, %170 : vector<32x128xf32>
    %172 = arith.truncf %171 : vector<32x128xf32> to vector<32x128xbf16>
    %c0_90 = arith.constant 0 : index
    %c0_91 = arith.constant 0 : index
    %c0_92 = arith.constant 0 : index
    %173 = vector.load %arg14[%c0_90, %c0_91, %c0_92] : memref<1x128x128xbf16, #tpu.memory_space<vmem>>, vector<1x128x128xbf16>
    %174 = vector.shape_cast %173 : vector<1x128x128xbf16> to vector<128x128xbf16>
    %cst_93 = arith.constant dense<0.000000e+00> : vector<32x128xf32>
    %175 = tpu.matmul %172, %174, %cst_93 {dimension_numbers = #tpu.dot_dimension_numbers<[1], [0], [0], [1], [0, 0, 1, 1], [], []>} : vector<32x128xbf16>, vector<128x128xbf16>, vector<32x128xf32> -> vector<32x128xf32>
    %c0_94 = arith.constant 0 : index
    %c0_95 = arith.constant 0 : index
    %c0_96 = arith.constant 0 : index
    %176 = vector.load %arg15[%c0_94, %c0_95, %c0_96] : memref<1x1x128xf32, #tpu.memory_space<vmem>>, vector<1x1x128xf32>
    %177 = vector.shape_cast %176 : vector<1x1x128xf32> to vector<1x128xf32>
    %178 = vector.broadcast %177 : vector<1x128xf32> to vector<32x128xf32>
    %179 = arith.addf %175, %178 : vector<32x128xf32>
    %180 = arith.addf %3, %179 : vector<32x128xf32>
    %c0_97 = arith.constant 0 : index
    %c0_98 = arith.constant 0 : index
    %181 = vector.load %arg17[%c0_97, %c0_98] : memref<32x128xf32, #tpu.memory_space<vmem>>, vector<32x128xf32>
    tpu.vector_store %arg17[%c0_97, %c0_98], %180 {strides = array<i32>} : memref<32x128xf32, #tpu.memory_space<vmem>>, vector<32x128xf32>,
    %c3_i32_99 = arith.constant 3 : i32
    %182 = arith.cmpi eq, %arg1, %c3_i32_99 : i32
    %183 = arith.extui %182 : i1 to i32
    %c0_i32_100 = arith.constant 0 : i32
    %184 = arith.cmpi ne, %183, %c0_i32_100 : i32
    scf.if %184 {
      %185 = vector.shape_cast %180 : vector<32x128xf32> to vector<2x16x128xf32>
      %c0_101 = arith.constant 0 : index
      %c0_102 = arith.constant 0 : index
      %c0_103 = arith.constant 0 : index
      %186 = vector.load %arg16[%c0_101, %c0_102, %c0_103] : memref<2x16x128xf32, #tpu.memory_space<vmem>>, vector<2x16x128xf32>
      tpu.vector_store %arg16[%c0_101, %c0_102, %c0_103], %185 {strides = array<i32>} : memref<2x16x128xf32, #tpu.memory_space<vmem>>, vector<2x16x128xf32>,
    } else {
    }
    return
  }
  func.func @transform_0(%arg0: i32, %arg1: i32, %arg2: memref<20xi32, #tpu.memory_space<smem>>) -> (i32, i32, i32) {
    %c0_i32 = arith.constant 0 : i32
    %c0_i32_0 = arith.constant 0 : i32
    %c0_i32_1 = arith.constant 0 : i32
    return %arg0, %c0_i32, %c0_i32_0 : i32, i32, i32
  }
  func.func @transform_1(%arg0: i32, %arg1: i32, %arg2: memref<20xi32, #tpu.memory_space<smem>>) -> (i32, i32, i32) {
    %c0_i32 = arith.constant 0 : i32
    %c0_i32_0 = arith.constant 0 : i32
    %c0_i32_1 = arith.constant 0 : i32
    return %arg1, %c0_i32, %c0_i32_0 : i32, i32, i32
  }
  func.func @transform_2(%arg0: i32, %arg1: i32, %arg2: memref<20xi32, #tpu.memory_space<smem>>) -> (i32, i32, i32) {
    %c0_i32 = arith.constant 0 : i32
    %c0_i32_0 = arith.constant 0 : i32
    %c0_i32_1 = arith.constant 0 : i32
    return %arg1, %c0_i32, %c0_i32_0 : i32, i32, i32
  }
  func.func @transform_3(%arg0: i32, %arg1: i32, %arg2: memref<20xi32, #tpu.memory_space<smem>>) -> (i32, i32, i32) {
    %c0_i32 = arith.constant 0 : i32
    %c0_i32_0 = arith.constant 0 : i32
    %c0_i32_1 = arith.constant 0 : i32
    return %arg1, %c0_i32, %c0_i32_0 : i32, i32, i32
  }
  func.func @transform_4(%arg0: i32, %arg1: i32, %arg2: memref<20xi32, #tpu.memory_space<smem>>) -> (i32, i32, i32) {
    %c0_i32 = arith.constant 0 : i32
    %c0_i32_0 = arith.constant 0 : i32
    %c0_i32_1 = arith.constant 0 : i32
    return %arg1, %c0_i32, %c0_i32_0 : i32, i32, i32
  }
  func.func @transform_5(%arg0: i32, %arg1: i32, %arg2: memref<20xi32, #tpu.memory_space<smem>>) -> (i32, i32, i32) {
    %c0_i32 = arith.constant 0 : i32
    %c0_i32_0 = arith.constant 0 : i32
    %c0_i32_1 = arith.constant 0 : i32
    return %arg1, %c0_i32, %c0_i32_0 : i32, i32, i32
  }
  func.func @transform_6(%arg0: i32, %arg1: i32, %arg2: memref<20xi32, #tpu.memory_space<smem>>) -> (i32, i32, i32) {
    %c0_i32 = arith.constant 0 : i32
    %c0_i32_0 = arith.constant 0 : i32
    %c0_i32_1 = arith.constant 0 : i32
    return %arg1, %c0_i32, %c0_i32_0 : i32, i32, i32
  }
  func.func @transform_7(%arg0: i32, %arg1: i32, %arg2: memref<20xi32, #tpu.memory_space<smem>>) -> (i32, i32, i32, i32) {
    %c0_i32 = arith.constant 0 : i32
    %c0_i32_0 = arith.constant 0 : i32
    %c0_i32_1 = arith.constant 0 : i32
    %c0_i32_2 = arith.constant 0 : i32
    return %arg1, %c0_i32, %c0_i32_0, %c0_i32_1 : i32, i32, i32, i32
  }
  func.func @transform_8(%arg0: i32, %arg1: i32, %arg2: memref<20xi32, #tpu.memory_space<smem>>) -> (i32, i32, i32) {
    %c0_i32 = arith.constant 0 : i32
    %c0_i32_0 = arith.constant 0 : i32
    %c0_i32_1 = arith.constant 0 : i32
    return %arg1, %c0_i32, %c0_i32_0 : i32, i32, i32
  }
  func.func @transform_9(%arg0: i32, %arg1: i32, %arg2: memref<20xi32, #tpu.memory_space<smem>>) -> (i32, i32, i32) {
    %c0_i32 = arith.constant 0 : i32
    %c0_i32_0 = arith.constant 0 : i32
    %c0_i32_1 = arith.constant 0 : i32
    return %arg1, %c0_i32, %c0_i32_0 : i32, i32, i32
  }
  func.func @transform_10(%arg0: i32, %arg1: i32, %arg2: memref<20xi32, #tpu.memory_space<smem>>) -> (i32, i32, i32) {
    %c0_i32 = arith.constant 0 : i32
    %c0_i32_0 = arith.constant 0 : i32
    %c0_i32_1 = arith.constant 0 : i32
    return %arg1, %c0_i32, %c0_i32_0 : i32, i32, i32
  }
  func.func @transform_11(%arg0: i32, %arg1: i32, %arg2: memref<20xi32, #tpu.memory_space<smem>>) -> (i32, i32, i32) {
    %c0_i32 = arith.constant 0 : i32
    %c0_i32_0 = arith.constant 0 : i32
    %c0_i32_1 = arith.constant 0 : i32
    return %arg1, %c0_i32, %c0_i32_0 : i32, i32, i32
  }
  func.func @transform_12(%arg0: i32, %arg1: i32, %arg2: memref<20xi32, #tpu.memory_space<smem>>) -> (i32, i32, i32) {
    %c0_i32 = arith.constant 0 : i32
    %c0_i32_0 = arith.constant 0 : i32
    %c0_i32_1 = arith.constant 0 : i32
    return %arg1, %c0_i32, %c0_i32_0 : i32, i32, i32
  }
  func.func @transform_13(%arg0: i32, %arg1: i32, %arg2: memref<20xi32, #tpu.memory_space<smem>>) -> (i32, i32, i32) {
    %c0_i32 = arith.constant 0 : i32
    %c0_i32_0 = arith.constant 0 : i32
    %c0_i32_1 = arith.constant 0 : i32
    return %arg0, %c0_i32, %c0_i32_0 : i32, i32, i32
  }
}

</mosaic_0001>

<bundles_post_ra>
// kernel: tpu_custom_call.1
= control target key start
LH: loop header
LB: loop body
LE: loop exit
PB: predicated region body
PF: predicated region fallthrough
CT: control target
= control target key end

     0   :  { %s3727_s0 = inlined_call_operand.hbm [shape: s32[20], index: 0, kind: input, shape index: {}]   ;;  %s3728_s1 = inlined_call_operand.hbm [shape: f32[4,16,128], index: 1, kind: input, shape index: {}]   ;;  %s3729_s2 = inlined_call_operand.vmem [shape: f32[4,1,128], index: 2, kind: input, shape index: {}]   ;;  %s3730_s3 = inlined_call_operand.vmem [shape: f32[4,1,128], index: 3, kind: input, shape index: {}]   ;;  %s3731_s4 = inlined_call_operand.hbm [shape: bf16[4,128,128], index: 4, kind: input, shape index: {}]   ;;  %s3732_s5 = inlined_call_operand.vmem [shape: f32[4,1,128], index: 5, kind: input, shape index: {}]   ;;  %s3733_s6 = inlined_call_operand.vmem [shape: f32[4,1,128], index: 6, kind: input, shape index: {}]   ;;  %s3734_s7 = inlined_call_operand.vmem [shape: f32[4,1,128], index: 7, kind: input, shape index: {}]   ;;  %s3735_s8 = inlined_call_operand.hbm [shape: bf16[4,5,128,128], index: 8, kind: input, shape index: {}]   ;;  %s3736_s9 = inlined_call_operand.vmem [shape: f32[4,1,128], index: 9, kind: input, shape index: {}]   ;;  %s3737_s10 = inlined_call_operand.vmem [shape: f32[4,1,128], index: 10, kind: input, shape index: {}]   ;;  %s3738_s11 = inlined_call_operand.vmem [shape: f32[4,1,128], index: 11, kind: input, shape index: {}]   ;;  %s3739_s12 = inlined_call_operand.hbm [shape: bf16[4,128,128], index: 12, kind: input, shape index: {}]   ;;  %s3740_s13 = inlined_call_operand.vmem [shape: f32[4,1,128], index: 13, kind: input, shape index: {}]   ;;  %s3741_s14 = inlined_call_operand.hbm [shape: f32[4,16,128], index: 14, kind: output, shape index: {}]  }
   0x1   :  { %3770 = sst [smem:[#allocation34_spill]] %s3728_s1  ;;  %s2722_s15 = scalar_lea.hbm %s3727_s0, 16 }
   0x2   :  { %3771 = sst [smem:[#allocation35_spill]] %s3729_s2  ;;  %p2723_p0 = scmp.ne.s32.totalorder %s3727_s0, %s2722_s15 }
   0x3   :  { %3772 = sst [smem:[#allocation36_spill]] %s3730_s3  ;;  %p2726_p1 = scmp.lt.u32.totalorder %s2722_s15, %s3727_s0 }
   0x4   :  { %3773 = sst [smem:[#allocation37_spill]] %s3731_s4 }
   0x5   :  { %3774 = sst [smem:[#allocation38_spill]] %s3732_s5  ;;  %p2728_p2 = pnand %p2726_p1, %p2723_p0 }
   0x6   :  { %3775 = sst [smem:[#allocation39_spill]] %s3733_s6 }
   0x7   :  { %3776 = sst [smem:[#allocation40_spill]] %s3734_s7 }
   0x8   :  { %3777 = sst [smem:[#allocation41_spill]] %s3735_s8 }
   0x9   :  { %3778 = sst [smem:[#allocation42_spill]] %s3736_s9 }
   0xa   :  { %3779 = sst [smem:[#allocation43_spill]] %s3737_s10 }
   0xb   :  { %3780 = sst [smem:[#allocation44_spill]] %s3738_s11 }
   0xc   :  { %3781 = sst [smem:[#allocation45_spill]] %s3739_s12 }
   0xd   :  { %3782 = sst [smem:[#allocation46_spill]] %s3740_s13 }
   0xe   :  { %3783 = sst [smem:[#allocation47_spill]] %s3741_s14 }
   0xf   :  { %2731 = shalt.err (!%p2728_p2)  }
  0x10   :  { %s2986_s20 = smov [#allocation5]  }
  0x11   :  { %20 = dma.hbm_to_smem %s3727_s0, 16, %s2986_s20, [#allocation4] }
  0x12   :  { %2924 = dma.done.wait [#allocation4], 16 }
  0x13   :  { %2925 = vsyncadd [#allocation4], 4294967280 }
  0x14   :  { %22 = sfence }
  0x15   :  { %23 = vsyncpa [#allocation7], 0 }
  0x16   :  { %25 = vsyncpa [#allocation7 + $0x1], 0 }
  0x17   :  { %26 = vsyncpa [#allocation10], 0 }
  0x18   :  { %28 = vsyncpa [#allocation10 + $0x1], 0 }
  0x19   :  { %29 = vsyncpa [#allocation13], 0 }
  0x1a   :  { %31 = vsyncpa [#allocation13 + $0x1], 0 }
  0x1b   :  { %32 = vsyncpa [#allocation8], 0 }
  0x1c   :  { %34 = vsyncpa [#allocation8 + $0x1], 0  ;;  %s3086_s23 = smov 0   ;;  %s3088_s24 = smov 0  }
  0x1d   :  { %s3090_s25 = smov 0   ;;  %s3092_s26 = smov 0  }
  0x1e   :  { %s3094_s0 = smov 0   ;;  %s3096_s27 = smov 0  }
  0x1f   :  { %s3098_s28 = smov 0   ;;  %s3100_s29 = smov 0  }
  0x20   :  { %s3102_s30 = smov 0   ;;  %s3104_s15 = smov 0  }
  0x21   :  { %s3106_s16 = smov 0  }
  0x22 LB: > { %3784 = sst [smem:[#allocation20_spill]] %s2948_s24  ;;  %s49_s17 = sadd.s32 1, %s2976_s30  ;;  %s2984_s16 = sphi %s3106_s16, %s40_s16   ;;  %s2980_s15 = sphi %s3104_s15, %s3865_s15   ;;  %s2976_s30 = sphi %s3102_s30, %s3864_s30   ;;  %s2972_s29 = sphi %s3100_s29, %s3863_s29   ;;  %s2968_s28 = sphi %s3098_s28, %s3862_s28   ;;  %s2964_s27 = sphi %s3096_s27, %s3861_s27   ;;  %s2960_s0 = sphi %s3094_s0, %s3860_s0   ;;  %s2956_s26 = sphi %s3092_s26, %s3859_s26   ;;  %s2952_s25 = sphi %s3090_s25, %s3858_s25   ;;  %s2948_s24 = sphi %s3088_s24, %s3857_s24   ;;  %s2944_s23 = sphi %s3086_s23, %s3856_s23  }
  0x23   : > { %3785 = sst [smem:[#allocation21_spill]] %s2952_s25  ;;  %p3748_p3 = scmp.eq.s32.totalorder %s2984_s16, 0 }
  0x24   : > { %3786 = sst [smem:[#allocation22_spill]] %s2956_s26  ;;  %p3143_p4 = scmp.ge.s32.totalorder %s49_s17, 4 }
  0x25   : > { %3787 = sst [smem:[#allocation23_spill]] %s2960_s0  ;;  %s137_s19 = sadd.s32 1, %s2952_s25 }
  0x26   : > { %3788 = sst [smem:[#allocation24_spill]] %s2964_s27  ;;  %p144_p5 = scmp.ne.s32.totalorder %s2952_s25, %s2948_s24 }
  0x27   : > { %3789 = sst [smem:[#allocation25_spill]] %s2968_s28  ;;  %s3867_s17 = smov (%p3143_p4, %s49_s17), 0 }
  0x28   : > { %3790 = sst [smem:[#allocation26_spill]] %s2972_s29  ;;  %p146_p7 = por %p144_p5, %p3748_p3 }
  0x29   : > { %3791 = sst [smem:[#allocation27_spill]] %s2976_s30  ;;  %s134_s20 = ssub.s32 %s2976_s30, %s3867_s17 }
  0x2a   : > { %3792 = sst [smem:[#allocation28_spill]] %s2980_s15  ;;  %p3747_p8 = scmp.lt.s32.totalorder %s2984_s16, 8 }
  0x2b   : > { %s3793_s18 = scalar_select %p3143_p4, 1, 0 }
  0x2c   : > { %3794 = sst [smem:[#allocation29_spill]] %s3867_s17  ;;  %p135_p9 = scmp.eq.s32.totalorder %s134_s20, 0 }
  0x2d   : > { %s468_s21 = sand.u32 1, %s2984_s16   ;;  %s3163_s22 = sand.u32 1, %s2952_s25  }
  0x2e   : > { %s3166_s14 = scalar_select %p135_p9, %s2952_s25, %s137_s19  }
  0x2f   : > { %s3744_s29 = sshll.u32 %s3163_s22, 6  ;;  %s3745_s13 = sshll.u32 %s2976_s30, 10 }
  0x30   : > { %3795 = sst [smem:[#allocation30_spill]] %s3166_s14  ;;  %s3796_s4 = sld [smem:[#allocation37_spill]] }
  0x31   : > { %s472_s20 = scalar_lea.vmem [#allocation9], %s3744_s29  ;;  %p3181_p10 = pnand %p3747_p8, %p146_p7 }
  0x32   : > { %s479_s17 = sshll.u32 %s472_s20, 4  ;;  %s3187_s19 = scalar_lea.sflag [#allocation10], %s468_s21  ;;  %s3185_s17 = int_to_ptr.vmem [resolvable:$true] %s479_s17 }
  0x33   : > { %s3797_s7 = scalar_select %p3181_p10, 1, 0 }
  0x34   : > { %p3193_p12 = pneg %p3181_p10 }
  0x36   : > { %s3175_s9 = scalar_lea.hbm %s3796_s4, %s3745_s13  ;;  %s2737_s13 = scalar_lea.hbm %s3796_s4, 4096 }
  0x37   : > { %s2732_s10 = scalar_lea.hbm %s3175_s9, 1024  ;;  %p2738_p1 = scmp.lt.u32.totalorder %s3175_s9, %s3796_s4 }
  0x38   : > { %p2733_p11 = scmp.ne.s32.totalorder %s3175_s9, %s2732_s10  ;;  %p2739_p2 = scmp.lt.u32.totalorder %s2737_s13, %s2732_s10 }
  0x39   : > { %p2741_p7 = scmp.lt.u32.totalorder %s2732_s10, %s3175_s9 }
  0x3a   : > { %p2735_p13 = pnand %p3193_p12, %p2733_p11  ;;  %p2740_p5 = por %p2739_p2, %p2738_p1 }
  0x3c   : > { %p2736_p0 = pneg %p2735_p13  ;;  %p2742_p9 = por %p2741_p7, %p2740_p5 }
  0x3e   : > { %p2743_p8 = pnand %p2742_p9, %p2736_p0 }
  0x40   : > { %2746 = shalt.err (!%p2743_p8)
}
  0x41   : > { %s2747_s21 = scalar_lea.vmem %s3185_s17, 1024  ;;  %s2987_s29 = smov [#allocation9]  }
  0x42   : > { %p2748_p11 = scmp.ne.s32.totalorder %s3185_s17, %s2747_s21  ;;  %s2752_s20 = sshll.u32 %s2987_s29, 4  ;;  %s2753_s20 = int_to_ptr.vmem [resolvable:$false] %s2752_s20 }
  0x43   : > { %s2754_s14 = scalar_lea.vmem %s2753_s20, 2048  ;;  %p2755_p3 = scmp.lt.s32.totalorder %s3185_s17, %s2753_s20 }
  0x44   : > { %p2750_p13 = pnand %p2748_p11, %p3193_p12  ;;  %p2756_p4 = scmp.lt.s32.totalorder %s2754_s14, %s2747_s21 }
  0x46   : > { %p2751_p6 = pneg %p2750_p13  ;;  %p2757_p1 = por %p2756_p4, %p2755_p3 }
  0x48   : > { %p2758_p2 = pnand %p2757_p1, %p2751_p6 }
  0x4a   : > { %2761 = shalt.err (!%p2758_p2)
}
  0x4b   : > { %s3750_s13 = smov 64   ;;  %s3752_s25 = smov 4  }
  0x4c   : > { %2529 = dma.hbm_to_vmem [thread:$0]  (!%p3181_p10), %s3175_s9, 1024, %s3185_s17, %s3187_s19, %s3750_s13, %s3750_s13, %s3752_s25  }
  0x4d   : > { %p2136_p3 = scmp.ge.s32.totalorder %s2984_s16, 1  ;;  %p571_p4 = scmp.lt.s32.totalorder %s2984_s16, 9 }
  0x4e   : > { %s3227_s21 = sadd.s32 4294967295, %s2984_s16   ;;  %s2122_s29 = sadd.s32 4294967294, %s2984_s16  }
  0x4f   : > { %p3222_p6 = pnand %p2136_p3, %p571_p4  ;;  %s52_s20 = sadd.s32 1, %s2980_s15 }
  0x50   : > { %p3800_p8 = scmp.ne.s32.totalorder %s3793_s18, 0  ;;  %s59_s9 = sadd.s32 1, %s2964_s27 }
  0x51   : > { %s3799_s10 = scalar_select %p3222_p6, 1, 0 }
  0x52   : > { %s3869_s20 = smov (!%p3800_p8, %s52_s20), %s2980_s15  ;;  %p66_p0 = scmp.ne.s32.totalorder %s2964_s27, %s2960_s0 }
  0x53   : > { %p54_p5 = scmp.ge.s32.totalorder %s3869_s20, 2  ;;  %p72_p7 = scmp.ne.s32.totalorder %s2960_s0, %s2956_s26 }
  0x54   : > { %p3801_p9 = scmp.eq.s32.totalorder %s2984_s16, 0  ;;  %p73_p13 = scmp.eq.s32.totalorder %s3227_s21, 0 }
  0x55   : > { %s3871_s20 = smov (%p54_p5, %s3869_s20), 0  ;;  %p3805_p2 = scmp.ne.s32.totalorder %s2948_s24, %s2944_s23 }
  0x56   : > { %p3241_p11 = por %p3801_p9, %p66_p0  ;;  %3803 = sst [smem:[#allocation31_spill]] %s3871_s20 }
  0x57   : > { %p3251_p1 = por %p73_p13, %p72_p7  ;;  %p3258_p3 = por %p3805_p2, %p73_p13 }
  0x58   : > { %s56_s13 = ssub.s32 %s2980_s15, %s3871_s20  ;;  %p408_p4 = scmp.eq.s32.totalorder %s3227_s21, 7 }
  0x59   : > { %s3804_s18 = scalar_select %p3251_p1, 1, 0 }
  0x5a   : > { %s3806_s14 = scalar_select %p3258_p3, 1, 0 }
  0x5b   : > { %p57_p8 = scmp.eq.s32.totalorder %s56_s13, 0  ;;  %p414_p9 = scmp.eq.s32.totalorder %s2122_s29, 7 }
  0x5c   : > { %p3265_p6 = por %p408_p4, %p66_p0  ;;  %s434_s4 = sand.u32 1, %s2964_s27  }
  0x5d   : > { %s3271_s6 = scalar_select %p57_p8, %s2964_s27, %s59_s9  }
  0x5e   : > { %s3807_s25 = scalar_select %p3265_p6, 1, 0 }
  0x5f   : > { %3808 = sst [smem:[#allocation32_spill]] %s3271_s6  ;;  %p3276_p5 = por %p414_p9, %p72_p7 }
  0x60   : > { %s2125_s23 = sshll.u32 %s434_s4, 5  ;;  %s2279_s3 = sshll.u32 %s2980_s15, 9 }
  0x61   : > { %s3809_s5 = scalar_select %p3276_p5, 1, 0 }
  0x62   : > { %s3811_s1 = sld [smem:[#allocation34_spill]]  ;;  %s438_s13 = scalar_lea.vmem [#allocation6], %s2125_s23 }
  0x63   : > { %3810 = sst [smem:[#allocation33_spill]] %s3809_s5  ;;  %s446_s29 = sshll.u32 %s438_s13, 4  ;;  %s3294_s29 = int_to_ptr.vmem [resolvable:$true] %s446_s29 }
  0x64   : > { %p3812_p0 = scmp.lt.s32.totalorder %s2984_s16, 8  ;;  %s3296_s15 = scalar_lea.sflag [#allocation7], %s434_s4 }
  0x66   : > { %p3290_p13 = pnand %p3812_p0, %p3241_p11 }
  0x68   : > { %s3284_s20 = scalar_lea.hbm %s3811_s1, %s2279_s3  ;;  %p2764_p2 = pneg %p3290_p13 }
  0x69   : > { %s2762_s2 = scalar_lea.hbm %s3284_s20, 512  ;;  %s2767_s17 = scalar_lea.hbm %s3811_s1, 1024 }
  0x6a   : > { %p2763_p7 = scmp.ne.s32.totalorder %s3284_s20, %s2762_s2  ;;  %p2768_p11 = scmp.lt.u32.totalorder %s3284_s20, %s3811_s1 }
  0x6b   : > { %p2769_p9 = scmp.lt.u32.totalorder %s2767_s17, %s2762_s2  ;;  %p2771_p5 = scmp.lt.u32.totalorder %s2762_s2, %s3284_s20 }
  0x6c   : > { %p2765_p4 = pnand %p2764_p2, %p2763_p7 }
  0x6d   : > { %p2770_p0 = por %p2769_p9, %p2768_p11 }
  0x6e   : > { %p2766_p8 = pneg %p2765_p4 }
  0x6f   : > { %p2772_p6 = por %p2771_p5, %p2770_p0 }
  0x71   : > { %p2773_p3 = pnand %p2772_p6, %p2766_p8 }
  0x73   : > { %2776 = shalt.err (!%p2773_p3)
}
  0x74   : > { %s2777_s4 = scalar_lea.vmem %s3294_s29, 512  ;;  %s2990_s3 = smov [#allocation6]  }
  0x75   : > { %p2778_p7 = scmp.ne.s32.totalorder %s3294_s29, %s2777_s4  ;;  %s2782_s28 = sshll.u32 %s2990_s3, 4  ;;  %s2783_s28 = int_to_ptr.vmem [resolvable:$false] %s2782_s28 }
  0x76   : > { %s2784_s23 = scalar_lea.vmem %s2783_s28, 1024  ;;  %p2785_p10 = scmp.lt.s32.totalorder %s3294_s29, %s2783_s28 }
  0x77   : > { %p2780_p4 = pnand %p2778_p7, %p2764_p2  ;;  %p2786_p11 = scmp.lt.s32.totalorder %s2784_s23, %s2777_s4 }
  0x79   : > { %p2781_p1 = pneg %p2780_p4  ;;  %p2787_p9 = por %p2786_p11, %p2785_p10 }
  0x7b   : > { %p2788_p5 = pnand %p2787_p9, %p2781_p1 }
  0x7d   : > { %2791 = shalt.err (!%p2788_p5)
}
  0x7e   : > { %s2991_s2 = smov 128   ;;  %s2992_s17 = smov 8  }
  0x7f   : > { %2526 = dma.hbm_to_vmem [thread:$0]  (!%p3290_p13), %s3284_s20, 512, %s3294_s29, %s3296_s15, %s2991_s2, %s2991_s2, %s2992_s17  }
  0x80   : > { %s2510_s13 = smul.u32 320, %s3163_s22  ;;  %s3814_s28 = sshll.u32 %s2976_s30, 10 }
  0x81   : > { %s2511_s3 = smul.u32 5120, %s2976_s30  ;;  %s3815_s12 = sld [smem:[#allocation45_spill]] }
  0x82   : > { %s3816_s8 = sld [smem:[#allocation41_spill]]  ;;  %s511_s26 = scalar_lea.vmem [#allocation11], %s2510_s13 }
  0x83   : > { %s518_s9 = sshll.u32 %s511_s26, 4  ;;  %s3817_s15 = sshll.u32 %s3163_s22, 6  ;;  %s3338_s9 = int_to_ptr.vmem [resolvable:$true] %s518_s9 }
  0x84   : > { %s3342_s20 = scalar_lea.vmem [#allocation12], %s3817_s15 }
  0x85   : > { %s557_s29 = sshll.u32 %s3342_s20, 4  ;;  %s3372_s29 = int_to_ptr.vmem [resolvable:$true] %s557_s29 }
  0x87   : > { %s3331_s1 = scalar_lea.hbm %s3815_s12, %s3814_s28 }
  0x88   : > { %s3336_s5 = scalar_lea.hbm %s3816_s8, %s2511_s3  ;;  %s2797_s17 = scalar_lea.hbm %s3816_s8, 20480 }
  0x89   : > { %s2792_s2 = scalar_lea.hbm %s3336_s5, 5120  ;;  %p2798_p3 = scmp.lt.u32.totalorder %s3336_s5, %s3816_s8 }
  0x8a   : > { %p2793_p10 = scmp.ne.s32.totalorder %s3336_s5, %s2792_s2  ;;  %p2799_p13 = scmp.lt.u32.totalorder %s2797_s17, %s2792_s2 }
  0x8b   : > { %p2801_p8 = scmp.lt.u32.totalorder %s2792_s2, %s3336_s5 }
  0x8c   : > { %p2795_p6 = pnand %p2793_p10, %p3193_p12  ;;  %p2800_p2 = por %p2799_p13, %p2798_p3 }
  0x8e   : > { %p2796_p1 = pneg %p2795_p6  ;;  %p2802_p0 = por %p2801_p8, %p2800_p2 }
  0x90   : > { %p2803_p7 = pnand %p2802_p0, %p2796_p1 }
  0x92   : > { %2806 = shalt.err (!%p2803_p7)
}
  0x93   : > { %s2807_s26 = scalar_lea.vmem %s3338_s9, 5120  ;;  %s2993_s13 = smov [#allocation11]  }
  0x94   : > { %p2808_p4 = scmp.ne.s32.totalorder %s3338_s9, %s2807_s26  ;;  %s2812_s4 = sshll.u32 %s2993_s13, 4  ;;  %s2813_s4 = int_to_ptr.vmem [resolvable:$false] %s2812_s4 }
  0x95   : > { %s2814_s23 = scalar_lea.vmem %s2813_s4, 10240  ;;  %p2815_p5 = scmp.lt.s32.totalorder %s3338_s9, %s2813_s4 }
  0x96   : > { %p2810_p11 = pnand %p2808_p4, %p3193_p12  ;;  %p2816_p10 = scmp.lt.s32.totalorder %s2814_s23, %s2807_s26 }
  0x98   : > { %p2811_p9 = pneg %p2810_p11  ;;  %p2817_p6 = por %p2816_p10, %p2815_p5 }
  0x9a   : > { %p2818_p3 = pnand %p2817_p6, %p2811_p9 }
  0x9c   : > { %2821 = shalt.err (!%p2818_p3)
}
  0x9d   : > { %p3818_p1 = scmp.ne.s32.totalorder %s3797_s7, 0  ;;  %s3819_s15 = smov 4  }
  0x9e   : > { %s3820_s2 = smov 64   ;;  %s547_s6 = scalar_lea.sflag [#allocation13], %s3163_s22 }
  0x9f   : > { %2532 = dma.hbm_to_vmem [thread:$0]  (!%p3818_p1), %s3336_s5, 5120, %s3338_s9, %s3187_s19, %s3820_s2, %s3820_s2, %s3819_s15  }
  0xa0   : > { %s2822_s27 = scalar_lea.hbm %s3331_s1, 1024  ;;  %s2827_s28 = scalar_lea.hbm %s3815_s12, 4096 }
  0xa1   : > { %p2823_p13 = scmp.ne.s32.totalorder %s3331_s1, %s2822_s27  ;;  %p2828_p0 = scmp.lt.u32.totalorder %s3331_s1, %s3815_s12 }
  0xa2   : > { %p2829_p7 = scmp.lt.u32.totalorder %s2827_s28, %s2822_s27  ;;  %p2831_p11 = scmp.lt.u32.totalorder %s2822_s27, %s3331_s1 }
  0xa3   : > { %p2825_p2 = pnand %p2823_p13, %p3193_p12 }
  0xa4   : > { %p2830_p4 = por %p2829_p7, %p2828_p0 }
  0xa5   : > { %p2826_p8 = pneg %p2825_p2 }
  0xa6   : > { %p2832_p9 = por %p2831_p11, %p2830_p4 }
  0xa8   : > { %p2833_p5 = pnand %p2832_p9, %p2826_p8 }
  0xaa   : > { %2836 = shalt.err (!%p2833_p5)
}
  0xab   : > { %s2837_s5 = scalar_lea.vmem %s3372_s29, 1024  ;;  %s2994_s19 = smov [#allocation12]  }
  0xac   : > { %p2838_p10 = scmp.ne.s32.totalorder %s3372_s29, %s2837_s5  ;;  %s2842_s9 = sshll.u32 %s2994_s19, 4  ;;  %s2843_s9 = int_to_ptr.vmem [resolvable:$false] %s2842_s9 }
  0xad   : > { %s2844_s20 = scalar_lea.vmem %s2843_s9, 2048  ;;  %p2845_p13 = scmp.lt.s32.totalorder %s3372_s29, %s2843_s9 }
  0xae   : > { %p2840_p6 = pnand %p2838_p10, %p3193_p12  ;;  %p2846_p2 = scmp.lt.s32.totalorder %s2844_s20, %s2837_s5 }
  0xb0   : > { %p2841_p3 = pneg %p2840_p6  ;;  %p2847_p0 = por %p2846_p2, %p2845_p13 }
  0xb2   : > { %p2848_p7 = pnand %p2847_p0, %p2841_p3 }
  0xb4   : > { %2851 = shalt.err (!%p2848_p7)
}
  0xb5   : > { %2535 = dma.hbm_to_vmem [thread:$0]  (!%p3818_p1), %s3331_s1, 1024, %s3372_s29, %s547_s6, %s3820_s2, %s3820_s2, %s3819_s15  }
  0xb6   : > { %p3821_p12 = scmp.ne.s32.totalorder %s3799_s10, 0 }
  0xb7   : > { %s3404_s11 = sand.u32 (!%p3821_p12), 1, %s2960_s0   ;;  %p3822_p8 = scmp.ne.s32.totalorder (!%p3821_p12), %s3804_s18, 0 }
  0xb8   : > { %575 = sbr.rel (%p3821_p12) target bundleno = 1973 (0x7b5), region = 72  ;;  %s3766_s4 = sshll.u32 (!%p3821_p12), %s3404_s11, 5 }
  0xb9   : > { %s578_s7 = scalar_lea.sflag (!%p3821_p12), [#allocation7], %s3404_s11  ;;  %s3410_s23 = scalar_lea.vmem (!%p3821_p12), [#allocation6], %s3766_s4 }
  0xbf   : > { %2927 = dma.done.wait (%p3822_p8), %s578_s7, 512  }
  0xc0   : > { %2929 = vsyncadd (%p3822_p8), %s578_s7, 4294966784  ;;  %s586_s1 = sand.u32 1, %s3227_s21   ;;  %s588_s22 = sand.u32 1, %s2948_s24  }
  0xc1   : > { %s2138_s10 = sshll.u32 %s588_s22, 6  ;;  %s587_s29 = scalar_lea.sflag [#allocation10], %s586_s1 }
  0xc2   : > { %s3418_s15 = scalar_lea.vmem [#allocation9], %s2138_s10  ;;  %p3823_p1 = scmp.ne.s32.totalorder %s3806_s14, 0 }
  0xc4   : > { %2931 = dma.done.wait (%p3823_p1), %s587_s29, 6144  }
  0xc5   : > { %2933 = vsyncadd (%p3823_p1), %s587_s29, 4294961152  ;;  %s2512_s2 = smul.u32 320, %s588_s22  ;;  %s605_s18 = scalar_lea.sflag [#allocation13], %s588_s22 }
  0xc6   : > { %s3426_s27 = scalar_lea.vmem [#allocation12], %s2138_s10 }
  0xc7   : > { %s3424_s6 = scalar_lea.vmem [#allocation11], %s2512_s2 }
  0xc8   : > { %2935 = dma.done.wait (%p3823_p1), %s605_s18, 1024  }
  0xc9   : > { %2937 = vsyncadd (%p3823_p1), %s605_s18, 4294966272  ;;  %s3824_s21 = sld [smem:[#allocation25_spill]]  ;;  %s3829_s4 = sld [smem:[#allocation40_spill]] }
  0xca   : > { %s3830_s0 = sld [smem:[#allocation42_spill]]  ;;  %s3831_s13 = sld [smem:[#allocation43_spill]] }
  0xcb   : > { %s3832_s20 = sld [smem:[#allocation44_spill]]  ;;  %s3833_s10 = sld [smem:[#allocation46_spill]] }
  0xcc   : > { %s3834_s2 = sshll.u32 %s3404_s11, 5 }
  0xcd   : > { %s3474_s18 = scalar_lea.vmem [#allocation14], %s3834_s2 }
  0xcf   : > { %p694_p4 = scmp.lt.s32.totalorder %s3824_s21, 3  ;;  %p2141_p11 = scmp.ne.s32.totalorder %s3824_s21, 0 }
  0xd0   : > { %v727_v0 = vld [vmem:[%s3410_s23] sm:$0xff] (!%p2141_p11)  ;;  %v728_v1 = vld [vmem:[%s3410_s23 + $0x8] sm:$0xff] (!%p2141_p11)  ;;  %v729_v2 = vld [vmem:[%s3410_s23 + $0x10] sm:$0xff] (!%p2141_p11)  ;;  %v2995_v4 = vmov (!%p2141_p11), 0.0  }
  0xd1   : > { %s3434_s17 = scalar_select %p694_p4, %s3824_s21, 3 }
  0xd2   : > { %726 = sbr.rel (%p2141_p11) target bundleno = 217 (0xd9), region = 92  ;;  %731 = vst [vmem:[#allocation2] sm:$0xff] (!%p2141_p11), %v727_v0  ;;  %732 = vst [vmem:[#allocation2 + $0x8] sm:$0xff] (!%p2141_p11), %v728_v1  ;;  %v730_v3 = vld [vmem:[%s3410_s23 + $0x18] sm:$0xff] (!%p2141_p11) }
  0xd3   : > { %s708_s8 = scalar_lea.vmem %s3829_s4, %s3434_s17  ;;  %s711_s26 = scalar_lea.vmem %s3830_s0, %s3434_s17  ;;  %733 = vst [vmem:[#allocation2 + $0x10] sm:$0xff] (!%p2141_p11), %v729_v2  ;;  %735 = vst [vmem:[#allocation3] sm:$0xff] (!%p2141_p11), %v2995_v4 }
  0xd4   : > { %s714_s5 = scalar_lea.vmem %s3831_s13, %s3434_s17  ;;  %s717_s7 = scalar_lea.vmem %s3832_s20, %s3434_s17  ;;  %736 = vst [vmem:[#allocation3 + $0x20] sm:$0xff] (!%p2141_p11), %v2995_v4  ;;  %737 = vst [vmem:[#allocation3 + $0x18] sm:$0xff] (!%p2141_p11), %v2995_v4 }
  0xd5   : > { %s720_s29 = scalar_lea.vmem %s3833_s10, %s3434_s17  ;;  %738 = vst [vmem:[#allocation3 + $0x38] sm:$0xff] (!%p2141_p11), %v2995_v4  ;;  %734 = vst [vmem:[#allocation2 + $0x18] sm:$0xff] (!%p2141_p11), %v730_v3 }
  0xd9 PF: > { %v739_v5 = vld [vmem:[#allocation2] sm:$0xff]  ;;  %v740_v7 = vld [vmem:[#allocation2 + $0x8] sm:$0xff]  ;;  %v761_v9 = vlaneseq  ;;  %v2640_v33 = vld [vmem:[%s3418_s15 + $0x10] sm:$0xff]   ;;  %s3835_s0 = sld [smem:[#allocation35_spill]]  ;;  %s3839_s22 = sld [smem:[#allocation38_spill]] }
  0xda   : > { %v741_v6 = vld [vmem:[#allocation2 + $0x10] sm:$0xff]  ;;  %745 = vadd.xlane.f32.xlu0 %v739_v5  ;;  %v2638_v31 = vld [vmem:[%s3418_s15] sm:$0xff]   ;;  %v2639_v32 = vld [vmem:[%s3418_s15 + $0x8] sm:$0xff]   ;;  %s3841_s28 = sld [smem:[#allocation25_spill]]  ;;  %s3842_s20 = sld [smem:[#allocation39_spill]] }
  0xdb   : > { %749 = vadd.xlane.f32.xlu1 %v741_v6  ;;  %v3481_v10 = vand.u32 127, %v761_v9  ;;  %2354 = vmatprep.subr.bf16.mxu0 %v2638_v31  ;;  %v2641_v34 = vld [vmem:[%s3418_s15 + $0x18] sm:$0xff]   ;;  %v2642_v35 = vld [vmem:[%s3418_s15 + $0x20] sm:$0xff]   ;;  %v2643_v36 = vld [vmem:[%s3418_s15 + $0x28] sm:$0xff]  }
  0xdc   : > { %v742_v8 = vld [vmem:[#allocation2 + $0x18] sm:$0xff]  ;;  %2355 = vmatpush3.bf16.msra.mxu0 %v2638_v31  ;;  %v2644_v37 = vld [vmem:[%s3418_s15 + $0x30] sm:$0xff]  }
  0xdd   : > { %vm763_vm0 = vcmp.lt.s32.totalorder %v3481_v10, 32  ;;  %2356 = vmatprep.subr.bf16.mxu0 %v2639_v32  ;;  %v2645_v38 = vld [vmem:[%s3418_s15 + $0x38] sm:$0xff]   ;;  %s3837_s15 = sld [smem:[#allocation36_spill]]  ;;  %vm960_vm1 = vcmp.lt.s32.totalorder %v3481_v10, 16  ;;  %v2691_v10 = vld [vmem:[%s3426_s27 + $0x28] sm:$0xff]  }
  0xde   : > { %747 = vadd.xlane.f32.xlu0 %v740_v7 }
  0xdf   : > { %751 = vadd.xlane.f32.xlu1 %v742_v8  ;;  %s3836_s30 = scalar_lea.vmem %s3835_s0, %s3434_s17  ;;  %s3840_s3 = scalar_lea.vmem %s3839_s22, %s3434_s17 }
  0xe0   : > { %2357 = vmatpush3.bf16.msra.mxu0 %v2639_v32  ;;  %v2142_v52 = vld [vmem:[%s3836_s30] ss:$0 sm:$0xff]  ;;  %s3843_s1 = scalar_lea.vmem %s3842_s20, %s3434_s17  ;;  %s3565_s24 = smul.u32 5, %s3841_s28 }
  0xe1   : > { %2358 = vmatprep.subr.bf16.mxu0 %v2640_v33  ;;  %p2271_p9 = scmp.ne.s32.totalorder %s3841_s28, 3 }
  0xe2   : > { %s1266_s0 = sadd.s32 2, %s3565_s24  ;;  %s1022_s4 = sld [smem:[#allocation5 + %s3565_s24]] }
  0xe3   : > { %s3838_s21 = scalar_lea.vmem %s3837_s15, %s3434_s17  ;;  %s1267_s23 = sld [smem:[#allocation5 + %s1266_s0]] }
  0xe4   : > { %2359 = vmatpush3.bf16.msra.mxu0 %v2640_v33  ;;  %v2143_v56 = vld [vmem:[%s3838_s21] ss:$0 sm:$0xff]  ;;  %s1393_s9 = sadd.s32 3, %s3565_s24  ;;  %s1520_s13 = sadd.s32 4, %s3565_s24 }
  0xe5   : > { %2360 = vmatprep.subr.bf16.mxu0 %v2641_v34  ;;  %s1394_s22 = sld [smem:[#allocation5 + %s1393_s9]] }
  0xe6   : > { %s1521_s19 = sld [smem:[#allocation5 + %s1520_s13]] }
  0xe8   : > { %2361 = vmatpush3.bf16.msra.mxu0 %v2641_v34  ;;  %s1023_s21 = scalar_lea.vmem [#allocation3], %s1022_s4 }
  0xe9   : > { %2362 = vmatprep.subr.bf16.mxu0 %v2642_v35  ;;  %s3572_s14 = scalar_lea.vmem [#allocation3], %s1267_s23 }
  0xec   : > { %2363 = vmatpush3.bf16.msra.mxu0 %v2642_v35  ;;  %s3603_s20 = scalar_lea.vmem [#allocation3], %s1521_s19 }
  0xed   : > { %2364 = vmatprep.subr.bf16.mxu0 %v2643_v36 }
  0xf0   : > { %2365 = vmatpush3.bf16.msra.mxu0 %v2643_v36 }
  0xf1   : > { %2366 = vmatprep.subr.bf16.mxu0 %v2644_v37 }
  0xf4   : > { %2367 = vmatpush3.bf16.msra.mxu0 %v2644_v37 }
  0xf5   : > { %2368 = vmatprep.subr.bf16.mxu0 %v2645_v38 }
  0xf8   : > { %2369 = vmatpush3.bf16.msra.mxu0 %v2645_v38 }
 0x167   : > { %v746_v11 = vpop.xlane.xlu0 %745 }
 0x168   : > { %v750_v12 = vpop.xlane.xlu1 %749  ;;  %v753_v13 = vmul.f32 0.03125, %v746_v11 }
 0x169   : > { %v755_v14 = vmul.f32 0.03125, %v750_v12  ;;  %v2144_v12 = vld [vmem:[%s3840_s3] ss:$0 sm:$0xff]  ;;  %s3588_s3 = scalar_lea.vmem [#allocation3], %s1394_s22 }
 0x16a   : > { %v757_v15 = vsub.f32 %v739_v5, %v753_v13 }
 0x16b   : > { %v759_v16 = vsub.f32 %v741_v6, %v755_v14  ;;  %v748_v17 = vpop.xlane.xlu0 %747 }
 0x16c   : > { %v752_v18 = vpop.xlane.xlu1 %751  ;;  %v754_v19 = vmul.f32 0.03125, %v748_v17  ;;  %v764_v21 = vsel %vm763_vm0, %v757_v15, 0.0 }
 0x16d   : > { %v756_v20 = vmul.f32 0.03125, %v752_v18  ;;  %v766_v22 = vsel %vm763_vm0, %v759_v16, 0.0  ;;  %v768_v23 = vmul.f32 %v764_v21, %v764_v21 }
 0x16e   : > { %v758_v24 = vsub.f32 %v740_v7, %v754_v19  ;;  %v770_v26 = vmul.f32 %v766_v22, %v766_v22 }
 0x16f   : > { %v760_v25 = vsub.f32 %v742_v8, %v756_v20  ;;  %772 = vadd.xlane.f32.xlu0 %v768_v23 }
 0x170   : > { %v765_v27 = vsel %vm763_vm0, %v758_v24, 0.0 }
 0x171   : > { %v767_v28 = vsel %vm763_vm0, %v760_v25, 0.0  ;;  %v769_v29 = vmul.f32 %v765_v27, %v765_v27 }
 0x172   : > { %v771_v30 = vmul.f32 %v767_v28, %v767_v28 }
 0x173   : > { %776 = vadd.xlane.f32.xlu0 %v770_v26  ;;  %774 = vadd.xlane.f32.xlu1 %v769_v29 }
 0x177   : > { %778 = vadd.xlane.f32.xlu1 %v771_v30 }
 0x1fc   : > { %v773_v39 = vpop.xlane.xlu0 %772 }
 0x1fd   : > { %v780_v40 = vmul.f32 0.03125, %v773_v39 }
 0x1ff   : > { %v784_v41 = vadd.f32 1e-05, %v780_v40 }
 0x200   : > { %v775_v42 = vpop.xlane.xlu1 %774  ;;  %v777_v43 = vpop.xlane.xlu0 %776 }
 0x201   : > { %2694 = vrsqrt.f32 %v784_v41  ;;  %v781_v44 = vmul.f32 0.03125, %v775_v42  ;;  %v782_v45 = vmul.f32 0.03125, %v777_v43  ;;  %v2646_v41 = vld [vmem:[%s3424_s6] sm:$0xff]   ;;  %v2648_v43 = vld [vmem:[%s3424_s6 + $0x8] sm:$0xff]  }
 0x202   : > { %v2647_v42 = vld [vmem:[%s3424_s6 + $0x40] sm:$0xff]   ;;  %2394 = vmatprep.subr.bf16.mxu1 %v2646_v41 }
 0x203   : > { %v785_v46 = vadd.f32 1e-05, %v781_v44  ;;  %v786_v47 = vadd.f32 1e-05, %v782_v45  ;;  %2374 = vmatprep.subr.bf16.mxu0 %v2647_v42  ;;  %2395 = vmatpush3.bf16.msra.mxu1 %v2646_v41  ;;  %v2649_v44 = vld [vmem:[%s3424_s6 + $0x48] sm:$0xff]   ;;  %v2650_v45 = vld [vmem:[%s3424_s6 + $0x10] sm:$0xff]  }
 0x204   : > { %v779_v48 = vpop.xlane.xlu1 %778  ;;  %2396 = vmatprep.subr.bf16.mxu1 %v2648_v43 }
 0x205   : > { %2696 = vrsqrt.f32 %v785_v46  ;;  %v783_v49 = vmul.f32 0.03125, %v779_v48  ;;  %v2651_v46 = vld [vmem:[%s3424_s6 + $0x50] sm:$0xff]   ;;  %v2653_v48 = vld [vmem:[%s3424_s6 + $0x58] sm:$0xff]  }
 0x206   : > { %2698 = vrsqrt.f32 %v786_v47  ;;  %v2652_v47 = vld [vmem:[%s3424_s6 + $0x18] sm:$0xff]  }
 0x207   : > { %v787_v50 = vadd.f32 1e-05, %v783_v49  ;;  %2397 = vmatpush3.bf16.msra.mxu1 %v2648_v43  ;;  %v2654_v49 = vld [vmem:[%s3424_s6 + $0x20] sm:$0xff]   ;;  %v2663_v43 = vld [vmem:[%s3424_s6 + $0x88] sm:$0xff]  }
 0x208   : > { %2398 = vmatprep.subr.bf16.mxu1 %v2650_v45 }
 0x209   : > { %2700 = vrsqrt.f32 %v787_v50  ;;  %v2655_v50 = vld [vmem:[%s3424_s6 + $0x60] sm:$0xff]  }
 0x20b   : > { %v2695_v51 = vpop.eup %2694  ;;  %2399 = vmatpush3.bf16.msra.mxu1 %v2650_v45  ;;  %v2664_v45 = vld [vmem:[%s3424_s6 + $0x90] sm:$0xff]  }
 0x20c   : > { %v792_v53 = vmul.f32 %v2695_v51, %v764_v21  ;;  %2400 = vmatprep.subr.bf16.mxu1 %v2652_v47  ;;  %v2656_v51 = vld [vmem:[%s3424_s6 + $0x28] sm:$0xff]  }
 0x20e   : > { %v802_v54 = vmul.f32 %v2142_v52, %v792_v53  ;;  %v2658_v53 = vld [vmem:[%s3424_s6 + $0x30] sm:$0xff]  }
 0x20f   : > { %v2697_v55 = vpop.eup %2696  ;;  %2401 = vmatpush3.bf16.msra.mxu1 %v2652_v47  ;;  %v2666_v47 = vld [vmem:[%s3424_s6 + $0xa0] sm:$0xff]  }
 0x210   : > { %v2699_v57 = vpop.eup %2698  ;;  %v793_v58 = vmul.f32 %v2697_v55, %v765_v27  ;;  %v812_v61 = vadd.f32 %v2143_v56, %v802_v54  ;;  %2402 = vmatprep.subr.bf16.mxu1 %v2654_v49  ;;  %v2659_v54 = vld [vmem:[%s3424_s6 + $0x70] sm:$0xff]   ;;  %v2660_v55 = vld [vmem:[%s3424_s6 + $0x38] sm:$0xff]  }
 0x211   : > { %v794_v59 = vmul.f32 %v2699_v57, %v766_v22  ;;  %v3549_v57 = vld [vmem:[%s3424_s6 + $0x80] sm:$0xff]  }
 0x212   : > { %v803_v60 = vmul.f32 %v2142_v52, %v793_v58  ;;  %v816_v2 = vmax.f32 %v812_v61, 0.0 }
 0x213   : > { %v2701_v62 = vpop.eup %2700  ;;  %v804_v63 = vmul.f32 %v2142_v52, %v794_v59  ;;  %2403 = vmatpush3.bf16.msra.mxu1 %v2654_v49  ;;  %v2668_v49 = vld [vmem:[%s3424_s6 + $0xb0] sm:$0xff]  }
 0x214   : > { %v813_v0 = vadd.f32 %v2143_v56, %v803_v60  ;;  %v795_v1 = vmul.f32 %v2701_v62, %v767_v28  ;;  %2404 = vmatprep.subr.bf16.mxu1 %v2656_v51 }
 0x215   : > { %v814_v5 = vadd.f32 %v2143_v56, %v804_v63 }
 0x216   : > { %v817_v3 = vmax.f32 %v813_v0, 0.0  ;;  %v805_v4 = vmul.f32 %v2142_v52, %v795_v1  ;;  %v2657_v52 = vld [vmem:[%s3424_s6 + $0x68] sm:$0xff]  }
 0x217   : > { %v818_v8 = vmax.f32 %v814_v5, 0.0  ;;  %2405 = vmatpush3.bf16.msra.mxu1 %v2656_v51  ;;  %v2670_v51 = vld [vmem:[%s3424_s6 + $0xc0] sm:$0xff]  }
 0x218   : > { %v820_v6 = vpack.c.bf16 %v817_v3, %v816_v2  ;;  %v815_v7 = vadd.f32 %v2143_v56, %v805_v4  ;;  %2406 = vmatprep.subr.bf16.mxu1 %v2658_v53  ;;  %v2661_v56 = vld [vmem:[%s3424_s6 + $0x78] sm:$0xff]  }
 0x21a   : > { %2370 = vmatprep.mubr.bf16.mxu0 %v820_v6  ;;  %v819_v9 = vmax.f32 %v815_v7, 0.0  ;;  %v2153_v7 = vld [vmem:[%s3843_s1] ss:$0 sm:$0xff] }
 0x21b   : > { %2407 = vmatpush3.bf16.msra.mxu1 %v2658_v53 }
 0x21c   : > { %v821_v11 = vpack.c.bf16 %v819_v9, %v818_v8  ;;  %2408 = vmatprep.subr.bf16.mxu1 %v2660_v55 }
 0x21e   : > { %2371 = vmatmul.mubr.bf16.vlgmr.msra.gmra.mrb[0].mxu0 %v821_v11  ;;  %v2154_v11 = vld [vmem:[%s708_s8] ss:$0 sm:$0xff]  ;;  %s1046_s8 = sadd.s32 1, %s3565_s24 }
 0x21f   : > { %2375 = vmatpush3.bf16.msra.mxu0 %v2647_v42  ;;  %2409 = vmatpush3.bf16.msra.mxu1 %v2660_v55  ;;  %s1047_s30 = sld [smem:[#allocation5 + %s1046_s8]] }
 0x220   : > { %2376 = vmatprep.subr.bf16.mxu0 %v2649_v44  ;;  %2414 = vmatprep.subr.bf16.mxu1 %v3549_v57 }
 0x223   : > { %2377 = vmatpush3.bf16.msra.mxu0 %v2649_v44 }
 0x224   : > { %2378 = vmatprep.subr.bf16.mxu0 %v2651_v46 }
 0x225   : > { %s1048_s15 = scalar_lea.vmem [#allocation3], %s1047_s30 }
 0x227   : > { %2379 = vmatpush3.bf16.msra.mxu0 %v2651_v46  ;;  %v2665_v46 = vld [vmem:[%s3424_s6 + $0x98] sm:$0xff]  }
 0x228   : > { %2380 = vmatprep.subr.bf16.mxu0 %v2653_v48 }
 0x22b   : > { %2381 = vmatpush3.bf16.msra.mxu0 %v2653_v48  ;;  %v2667_v48 = vld [vmem:[%s3424_s6 + $0xa8] sm:$0xff]  }
 0x22c   : > { %2382 = vmatprep.subr.bf16.mxu0 %v2655_v50 }
 0x22f   : > { %2383 = vmatpush3.bf16.msra.mxu0 %v2655_v50  ;;  %v2669_v50 = vld [vmem:[%s3424_s6 + $0xb8] sm:$0xff]  }
 0x230   : > { %2384 = vmatprep.subr.bf16.mxu0 %v2657_v52 }
 0x233   : > { %2385 = vmatpush3.bf16.msra.mxu0 %v2657_v52 }
 0x234   : > { %2386 = vmatprep.subr.bf16.mxu0 %v2659_v54 }
 0x237   : > { %2387 = vmatpush3.bf16.msra.mxu0 %v2659_v54 }
 0x238   : > { %2388 = vmatprep.subr.bf16.mxu0 %v2661_v56 }
 0x23b   : > { %2389 = vmatpush3.bf16.msra.mxu0 %v2661_v56 }
 0x2f1   : > { %v2372_v13 = vpop.f32.mrb[0].mxu0 }
 0x2f2   : > { %v927_v14 = vpop.f32.mrb[1].mxu0  ;;  %v936_v19 = vadd.f32 %v2372_v13, %v2144_v12 }
 0x2f3   : > { %v928_v15 = vadd.f32 %v2144_v12, %v927_v14  ;;  %v2373_v16 = vpop.f32.mrb[2].mxu0 }
 0x2f4   : > { %v930_v17 = vpop.f32.mrb[3].mxu0  ;;  %v939_v20 = vadd.f32 %v2373_v16, %v2144_v12 }
 0x2f5   : > { %v931_v18 = vadd.f32 %v2144_v12, %v930_v17  ;;  %944 = vadd.xlane.f32.xlu0 %v928_v15 }
 0x2f7   : > { %946 = vadd.xlane.f32.xlu1 %v931_v18 }
 0x2f9   : > { %948 = vadd.xlane.f32.xlu0 %v936_v19 }
 0x2fb   : > { %950 = vadd.xlane.f32.xlu1 %v939_v20 }
 0x382   : > { %v945_v21 = vpop.xlane.xlu0 %944 }
 0x383   : > { %v952_v22 = vmul.f32 0.0625, %v945_v21 }
 0x384   : > { %v947_v23 = vpop.xlane.xlu1 %946 }
 0x385   : > { %v956_v24 = vsub.f32 %v928_v15, %v952_v22  ;;  %v953_v25 = vmul.f32 0.0625, %v947_v23 }
 0x386   : > { %v949_v26 = vpop.xlane.xlu0 %948 }
 0x387   : > { %v957_v27 = vsub.f32 %v931_v18, %v953_v25  ;;  %v954_v28 = vmul.f32 0.0625, %v949_v26  ;;  %v3510_v29 = vsel %vm960_vm1, %v956_v24, 0.0 }
 0x388   : > { %v951_v30 = vpop.xlane.xlu1 %950  ;;  %v965_v31 = vmul.f32 %v3510_v29, %v3510_v29 }
 0x389   : > { %v958_v32 = vsub.f32 %v936_v19, %v954_v28  ;;  %v955_v33 = vmul.f32 0.0625, %v951_v30  ;;  %v3516_v34 = vsel %vm960_vm1, %v957_v27, 0.0 }
 0x38a   : > { %969 = vadd.xlane.f32.xlu0 %v965_v31  ;;  %v966_v35 = vmul.f32 %v3516_v34, %v3516_v34 }
 0x38b   : > { %v959_v36 = vsub.f32 %v939_v20, %v955_v33  ;;  %v3522_v37 = vsel %vm960_vm1, %v958_v32, 0.0 }
 0x38c   : > { %971 = vadd.xlane.f32.xlu1 %v966_v35  ;;  %v967_v38 = vmul.f32 %v3522_v37, %v3522_v37 }
 0x38d   : > { %v3528_v39 = vsel %vm960_vm1, %v959_v36, 0.0 }
 0x38e   : > { %973 = vadd.xlane.f32.xlu0 %v967_v38  ;;  %v968_v40 = vmul.f32 %v3528_v39, %v3528_v39 }
 0x390   : > { %975 = vadd.xlane.f32.xlu1 %v968_v40 }
 0x417   : > { %v970_v58 = vpop.xlane.xlu0 %969 }
 0x418   : > { %v977_v59 = vmul.f32 0.0625, %v970_v58 }
 0x419   : > { %v972_v60 = vpop.xlane.xlu1 %971 }
 0x41a   : > { %v981_v61 = vadd.f32 1e-05, %v977_v59  ;;  %v978_v62 = vmul.f32 0.0625, %v972_v60  ;;  %v2672_v59 = vld [vmem:[%s3424_s6 + $0xd0] sm:$0xff]   ;;  %v2673_v60 = vld [vmem:[%s3424_s6 + $0xd8] sm:$0xff]  }
 0x41b   : > { %v974_v63 = vpop.xlane.xlu0 %973 }
 0x41c   : > { %2702 = vrsqrt.f32 %v981_v61  ;;  %v982_v0 = vadd.f32 1e-05, %v978_v62  ;;  %v979_v1 = vmul.f32 0.0625, %v974_v63  ;;  %v2674_v61 = vld [vmem:[%s3424_s6 + $0xe0] sm:$0xff]   ;;  %v2675_v62 = vld [vmem:[%s3424_s6 + $0xe8] sm:$0xff]   ;;  %v2676_v63 = vld [vmem:[%s3424_s6 + $0xf0] sm:$0xff]  }
 0x41d   : > { %v976_v2 = vpop.xlane.xlu1 %975 }
 0x41e   : > { %2704 = vrsqrt.f32 %v982_v0  ;;  %v983_v3 = vadd.f32 1e-05, %v979_v1  ;;  %v980_v4 = vmul.f32 0.0625, %v976_v2  ;;  %v2677_v0 = vld [vmem:[%s3424_s6 + $0xf8] sm:$0xff]   ;;  %v2678_v1 = vld [vmem:[%s3424_s6 + $0x100] sm:$0xff]  }
 0x420   : > { %2706 = vrsqrt.f32 %v983_v3  ;;  %v984_v5 = vadd.f32 1e-05, %v980_v4 }
 0x422   : > { %2708 = vrsqrt.f32 %v984_v5 }
 0x426   : > { %v2703_v6 = vpop.eup %2702 }
 0x427   : > { %v989_v8 = vmul.f32 %v2703_v6, %v3510_v29 }
 0x428   : > { %v2705_v9 = vpop.eup %2704 }
 0x429   : > { %v999_v12 = vmul.f32 %v2153_v7, %v989_v8  ;;  %v990_v13 = vmul.f32 %v2705_v9, %v3516_v34  ;;  %v2680_v9 = vld [vmem:[%s3424_s6 + $0x110] sm:$0xff]  }
 0x42a   : > { %v2707_v14 = vpop.eup %2706 }
 0x42b   : > { %v1009_v15 = vadd.f32 %v2154_v11, %v999_v12  ;;  %v1000_v16 = vmul.f32 %v2153_v7, %v990_v13  ;;  %v991_v17 = vmul.f32 %v2707_v14, %v3522_v37  ;;  %v2682_v12 = vld [vmem:[%s3424_s6 + $0x120] sm:$0xff]   ;;  %v2683_v13 = vld [vmem:[%s3424_s6 + $0x128] sm:$0xff]   ;;  %v2684_v14 = vld [vmem:[%s3424_s6 + $0x130] sm:$0xff]  }
 0x42c   : > { %v2709_v18 = vpop.eup %2708 }
 0x42d   : > { %v1013_v19 = vmax.f32 %v1009_v15, 0.0  ;;  %v1010_v20 = vadd.f32 %v2154_v11, %v1000_v16  ;;  %v1001_v21 = vmul.f32 %v2153_v7, %v991_v17  ;;  %v992_v22 = vmul.f32 %v2709_v18, %v3528_v39  ;;  %v2685_v15 = vld [vmem:[%s3424_s6 + $0x138] sm:$0xff]  }
 0x42f   : > { %1017 = vst [vmem:[#allocation3 + $0x8] sm:$0xff] %v1013_v19  ;;  %v1014_v23 = vmax.f32 %v1010_v20, 0.0  ;;  %v1011_v24 = vadd.f32 %v2154_v11, %v1001_v21  ;;  %v1002_v25 = vmul.f32 %v2153_v7, %v992_v22  ;;  %v2679_v7 = vld [vmem:[%s3424_s6 + $0x108] sm:$0xff]  }
 0x431   : > { %1018 = vst [vmem:[#allocation3 + $0x10] sm:$0xff] %v1014_v23  ;;  %v1015_v26 = vmax.f32 %v1011_v24, 0.0  ;;  %v1012_v27 = vadd.f32 %v2154_v11, %v1002_v25  ;;  %v2681_v11 = vld [vmem:[%s3424_s6 + $0x118] sm:$0xff]  }
 0x433   : > { %1019 = vst [vmem:[#allocation3 + $0x28] sm:$0xff] %v1015_v26  ;;  %v1016_v28 = vmax.f32 %v1012_v27, 0.0  ;;  %v2259_v26 = vld [vmem:[%s711_s26] ss:$0 sm:$0xff] }
 0x435   : > { %1020 = vst [vmem:[#allocation3 + $0x30] sm:$0xff] %v1016_v28 }
 0x43c   : > { %v1049_v29 = vld [vmem:[%s1048_s15] sm:$0xff]  ;;  %v1050_v30 = vld [vmem:[%s1048_s15 + $0x8] sm:$0xff] }
 0x43d   : > { %v1024_v31 = vld [vmem:[%s1023_s21] sm:$0xff]  ;;  %v1053_v32 = vpack.c.bf16 %v1050_v30, %v1049_v29  ;;  %v1025_v33 = vld [vmem:[%s1023_s21 + $0x8] sm:$0xff] }
 0x43e   : > { %v1051_v34 = vld [vmem:[%s1048_s15 + $0x20] sm:$0xff]  ;;  %v1052_v35 = vld [vmem:[%s1048_s15 + $0x28] sm:$0xff]  ;;  %v1028_v36 = vpack.c.bf16 %v1025_v33, %v1024_v31 }
 0x43f   : > { %v1054_v37 = vpack.c.bf16 %v1052_v35, %v1051_v34  ;;  %v1026_v38 = vld [vmem:[%s1023_s21 + $0x20] sm:$0xff]  ;;  %v1027_v39 = vld [vmem:[%s1023_s21 + $0x28] sm:$0xff]  ;;  %2390 = vmatprep.mubr.bf16.mxu0 %v1053_v32 }
 0x440   : > { %v1269_v40 = vld [vmem:[%s3572_s14] sm:$0xff]  ;;  %v1029_v41 = vpack.c.bf16 %v1027_v39, %v1026_v38  ;;  %v1270_v42 = vld [vmem:[%s3572_s14 + $0x8] sm:$0xff]  ;;  %2410 = vmatprep.mubr.bf16.mxu1 %v1028_v36 }
 0x441   : > { %2391 = vmatmul.mubr.bf16.vlgmr.msra.gmra.mrb[4].mxu0 %v1054_v37  ;;  %v1273_v44 = vpack.c.bf16 %v1270_v42, %v1269_v40  ;;  %v1271_v52 = vld [vmem:[%s3572_s14 + $0x20] sm:$0xff]  ;;  %v1272_v53 = vld [vmem:[%s3572_s14 + $0x28] sm:$0xff] }
 0x442   : > { %2411 = vmatmul.mubr.bf16.vlgmr.msra.gmra.mrb[0].mxu1 %v1029_v41  ;;  %v1396_v54 = vld [vmem:[%s3588_s3] sm:$0xff]  ;;  %v1397_v55 = vld [vmem:[%s3588_s3 + $0x8] sm:$0xff]  ;;  %v1274_v56 = vpack.c.bf16 %v1272_v53, %v1271_v52 }
 0x443   : > { %2415 = vmatpush3.bf16.msra.mxu1 %v3549_v57  ;;  %2430 = vmatprep.mubr.bf16.mxu1 %v1273_v44  ;;  %v2671_v57 = vld [vmem:[%s3424_s6 + $0xc8] sm:$0xff]   ;;  %v1400_v58 = vpack.c.bf16 %v1397_v55, %v1396_v54  ;;  %v1398_v2 = vld [vmem:[%s3588_s3 + $0x20] sm:$0xff]  ;;  %v1399_v3 = vld [vmem:[%s3588_s3 + $0x28] sm:$0xff] }
 0x444   : > { %2416 = vmatprep.subr.bf16.mxu1 %v2663_v43  ;;  %v1523_v4 = vld [vmem:[%s3603_s20] sm:$0xff]  ;;  %v1524_v5 = vld [vmem:[%s3603_s20 + $0x8] sm:$0xff]  ;;  %v1401_v6 = vpack.c.bf16 %v1399_v3, %v1398_v2 }
 0x445   : > { %v1527_v8 = vpack.c.bf16 %v1524_v5, %v1523_v4  ;;  %v1525_v16 = vld [vmem:[%s3603_s20 + $0x20] sm:$0xff]  ;;  %v1526_v17 = vld [vmem:[%s3603_s20 + $0x28] sm:$0xff] }
 0x446   : > { %v1528_v18 = vpack.c.bf16 %v1526_v17, %v1525_v16  ;;  %v2686_v36 = vld [vmem:[%s3426_s27] sm:$0xff]   ;;  %v2261_v16 = vld [vmem:[%s717_s7] ss:$0 sm:$0xff] }
 0x447   : > { %2417 = vmatpush3.bf16.msra.mxu1 %v2663_v43  ;;  %2474 = vmatprep.subr.bf16.mxu0 %v2686_v36 }
 0x448   : > { %2418 = vmatprep.subr.bf16.mxu1 %v2664_v45  ;;  %2475 = vmatpush3.bf16.msra.mxu0 %v2686_v36  ;;  %v2262_v36 = vld [vmem:[%s720_s29] ss:$0 sm:$0xff] }
 0x44b   : > { %2419 = vmatpush3.bf16.msra.mxu1 %v2664_v45 }
 0x44c   : > { %2420 = vmatprep.subr.bf16.mxu1 %v2665_v46 }
 0x44f   : > { %2421 = vmatpush3.bf16.msra.mxu1 %v2665_v46 }
 0x450   : > { %2422 = vmatprep.subr.bf16.mxu1 %v2666_v47 }
 0x453   : > { %2423 = vmatpush3.bf16.msra.mxu1 %v2666_v47 }
 0x454   : > { %2424 = vmatprep.subr.bf16.mxu1 %v2667_v48 }
 0x457   : > { %2425 = vmatpush3.bf16.msra.mxu1 %v2667_v48 }
 0x458   : > { %2426 = vmatprep.subr.bf16.mxu1 %v2668_v49 }
 0x45b   : > { %2427 = vmatpush3.bf16.msra.mxu1 %v2668_v49 }
 0x45c   : > { %2428 = vmatprep.subr.bf16.mxu1 %v2669_v50 }
 0x45f   : > { %2429 = vmatpush3.bf16.msra.mxu1 %v2669_v50 }
 0x460   : > { %2434 = vmatprep.subr.bf16.mxu1 %v2670_v51 }
 0x462   : > { %2431 = vmatmul.mubr.bf16.vlgmr.msra.gmra.mrb[0].mxu1 %v1274_v56 }
 0x463   : > { %2435 = vmatpush3.bf16.msra.mxu1 %v2670_v51  ;;  %2450 = vmatprep.mubr.bf16.mxu1 %v1400_v58  ;;  %v2688_v58 = vld [vmem:[%s3426_s27 + $0x10] sm:$0xff]  }
 0x464   : > { %2436 = vmatprep.subr.bf16.mxu1 %v2671_v57 }
 0x467   : > { %2437 = vmatpush3.bf16.msra.mxu1 %v2671_v57  ;;  %v2687_v57 = vld [vmem:[%s3426_s27 + $0x8] sm:$0xff]  }
 0x468   : > { %2438 = vmatprep.subr.bf16.mxu1 %v2672_v59  ;;  %2476 = vmatprep.subr.bf16.mxu0 %v2687_v57 }
 0x469   : > { %2477 = vmatpush3.bf16.msra.mxu0 %v2687_v57 }
 0x46a   : > { %2478 = vmatprep.subr.bf16.mxu0 %v2688_v58 }
 0x46b   : > { %2439 = vmatpush3.bf16.msra.mxu1 %v2672_v59  ;;  %v2689_v59 = vld [vmem:[%s3426_s27 + $0x18] sm:$0xff]  }
 0x46c   : > { %2440 = vmatprep.subr.bf16.mxu1 %v2673_v60 }
 0x46d   : > { %2479 = vmatpush3.bf16.msra.mxu0 %v2688_v58 }
 0x46e   : > { %2480 = vmatprep.subr.bf16.mxu0 %v2689_v59 }
 0x46f   : > { %2441 = vmatpush3.bf16.msra.mxu1 %v2673_v60  ;;  %v2690_v60 = vld [vmem:[%s3426_s27 + $0x20] sm:$0xff]  }
 0x470   : > { %2442 = vmatprep.subr.bf16.mxu1 %v2674_v61 }
 0x471   : > { %2481 = vmatpush3.bf16.msra.mxu0 %v2689_v59 }
 0x472   : > { %2482 = vmatprep.subr.bf16.mxu0 %v2690_v60 }
 0x473   : > { %2443 = vmatpush3.bf16.msra.mxu1 %v2674_v61  ;;  %v2692_v61 = vld [vmem:[%s3426_s27 + $0x30] sm:$0xff]  }
 0x474   : > { %2444 = vmatprep.subr.bf16.mxu1 %v2675_v62 }
 0x475   : > { %2483 = vmatpush3.bf16.msra.mxu0 %v2690_v60 }
 0x476   : > { %2484 = vmatprep.subr.bf16.mxu0 %v2691_v10 }
 0x477   : > { %2445 = vmatpush3.bf16.msra.mxu1 %v2675_v62  ;;  %v2693_v62 = vld [vmem:[%s3426_s27 + $0x38] sm:$0xff]  }
 0x478   : > { %2446 = vmatprep.subr.bf16.mxu1 %v2676_v63 }
 0x479   : > { %2485 = vmatpush3.bf16.msra.mxu0 %v2691_v10 }
 0x47a   : > { %2486 = vmatprep.subr.bf16.mxu0 %v2692_v61 }
 0x47b   : > { %2447 = vmatpush3.bf16.msra.mxu1 %v2676_v63 }
 0x47c   : > { %2448 = vmatprep.subr.bf16.mxu1 %v2677_v0 }
 0x47d   : > { %2487 = vmatpush3.bf16.msra.mxu0 %v2692_v61 }
 0x47e   : > { %2488 = vmatprep.subr.bf16.mxu0 %v2693_v62 }
 0x47f   : > { %2449 = vmatpush3.bf16.msra.mxu1 %v2677_v0 }
 0x480   : > { %2454 = vmatprep.subr.bf16.mxu1 %v2678_v1 }
 0x481   : > { %2489 = vmatpush3.bf16.msra.mxu0 %v2693_v62 }
 0x482   : > { %2451 = vmatmul.mubr.bf16.vlgmr.msra.gmra.mrb[0].mxu1 %v1401_v6 }
 0x483   : > { %2455 = vmatpush3.bf16.msra.mxu1 %v2678_v1  ;;  %2470 = vmatprep.mubr.bf16.mxu1 %v1527_v8 }
 0x484   : > { %2456 = vmatprep.subr.bf16.mxu1 %v2679_v7 }
 0x487   : > { %2457 = vmatpush3.bf16.msra.mxu1 %v2679_v7 }
 0x488   : > { %2458 = vmatprep.subr.bf16.mxu1 %v2680_v9 }
 0x48b   : > { %2459 = vmatpush3.bf16.msra.mxu1 %v2680_v9 }
 0x48c   : > { %2460 = vmatprep.subr.bf16.mxu1 %v2681_v11 }
 0x48f   : > { %2461 = vmatpush3.bf16.msra.mxu1 %v2681_v11 }
 0x490   : > { %2462 = vmatprep.subr.bf16.mxu1 %v2682_v12 }
 0x493   : > { %2463 = vmatpush3.bf16.msra.mxu1 %v2682_v12 }
 0x494   : > { %2464 = vmatprep.subr.bf16.mxu1 %v2683_v13 }
 0x497   : > { %2465 = vmatpush3.bf16.msra.mxu1 %v2683_v13  ;;  %v2260_v13 = vld [vmem:[%s714_s5] ss:$0 sm:$0xff] }
 0x498   : > { %2466 = vmatprep.subr.bf16.mxu1 %v2684_v14 }
 0x49b   : > { %2467 = vmatpush3.bf16.msra.mxu1 %v2684_v14 }
 0x49c   : > { %2468 = vmatprep.subr.bf16.mxu1 %v2685_v15 }
 0x49f   : > { %2469 = vmatpush3.bf16.msra.mxu1 %v2685_v15 }
 0x4a2   : > { %2471 = vmatmul.mubr.bf16.vlgmr.msra.gmra.mrb[0].mxu1 %v1528_v18 }
 0x514   : > { %v2392_v19 = vpop.f32.mrb[4].mxu0 }
 0x515   : > { %v1154_v20 = vpop.f32.mrb[5].mxu0 }
 0x516   : > { %v2393_v21 = vpop.f32.mrb[6].mxu0 }
 0x517   : > { %v1157_v22 = vpop.f32.mrb[7].mxu0 }
 0x575   : > { %v2472_v23 = vpop.f32.mrb[0].mxu1 }
 0x576   : > { %v2494_v24 = vadd.f32 %v2472_v23, %v2392_v19  ;;  %v1628_v25 = vpop.f32.mrb[1].mxu1 }
 0x577   : > { %v2495_v27 = vadd.f32 %v1628_v25, %v1154_v20  ;;  %v2473_v28 = vpop.f32.mrb[2].mxu1 }
 0x578   : > { %v2496_v29 = vadd.f32 %v2473_v28, %v2393_v21  ;;  %v1631_v30 = vpop.f32.mrb[3].mxu1  ;;  %v1656_v34 = vadd.f32 %v2494_v24, %v2259_v26 }
 0x579   : > { %v2497_v31 = vadd.f32 %v1631_v30, %v1157_v22  ;;  %v1654_v32 = vadd.f32 %v2495_v27, %v2259_v26 }
 0x57a   : > { %v1657_v35 = vadd.f32 %v2496_v29, %v2259_v26 }
 0x57b   : > { %1660 = vadd.xlane.f32.xlu0 %v1654_v32  ;;  %v1655_v33 = vadd.f32 %v2497_v31, %v2259_v26 }
 0x57d   : > { %1662 = vadd.xlane.f32.xlu1 %v1655_v33 }
 0x57f   : > { %1664 = vadd.xlane.f32.xlu0 %v1656_v34 }
 0x581   : > { %1666 = vadd.xlane.f32.xlu1 %v1657_v35 }
 0x608   : > { %v1661_v37 = vpop.xlane.xlu0 %1660 }
 0x609   : > { %v1668_v38 = vmul.f32 0.0625, %v1661_v37 }
 0x60a   : > { %v1663_v39 = vpop.xlane.xlu1 %1662 }
 0x60b   : > { %v1672_v40 = vsub.f32 %v1654_v32, %v1668_v38  ;;  %v1669_v41 = vmul.f32 0.0625, %v1663_v39 }
 0x60c   : > { %v1665_v42 = vpop.xlane.xlu0 %1664 }
 0x60d   : > { %v1673_v43 = vsub.f32 %v1655_v33, %v1669_v41  ;;  %v1670_v44 = vmul.f32 0.0625, %v1665_v42  ;;  %v1676_v45 = vsel %vm960_vm1, %v1672_v40, 0.0  ;;  %v2718_v42 = vld [vmem:[#allocation2 + $0x10] sm:$0xff] }
 0x60e   : > { %v1667_v46 = vpop.xlane.xlu1 %1666  ;;  %v1680_v47 = vmul.f32 %v1676_v45, %v1676_v45 }
 0x60f   : > { %v1674_v48 = vsub.f32 %v1656_v34, %v1670_v44  ;;  %v1671_v49 = vmul.f32 0.0625, %v1667_v46  ;;  %v1677_v50 = vsel %vm960_vm1, %v1673_v43, 0.0  ;;  %v2719_v46 = vld [vmem:[#allocation2] sm:$0xff] }
 0x610   : > { %1684 = vadd.xlane.f32.xlu0 %v1680_v47  ;;  %v1681_v51 = vmul.f32 %v1677_v50, %v1677_v50 }
 0x611   : > { %v1675_v52 = vsub.f32 %v1657_v35, %v1671_v49  ;;  %v1678_v53 = vsel %vm960_vm1, %v1674_v48, 0.0  ;;  %v2720_v49 = vld [vmem:[#allocation2 + $0x18] sm:$0xff] }
 0x612   : > { %1686 = vadd.xlane.f32.xlu1 %v1681_v51  ;;  %v1682_v54 = vmul.f32 %v1678_v53, %v1678_v53  ;;  %v2721_v51 = vld [vmem:[#allocation2 + $0x8] sm:$0xff] }
 0x613   : > { %v1679_v55 = vsel %vm960_vm1, %v1675_v52, 0.0 }
 0x614   : > { %1688 = vadd.xlane.f32.xlu0 %v1682_v54  ;;  %v1683_v56 = vmul.f32 %v1679_v55, %v1679_v55 }
 0x616   : > { %1690 = vadd.xlane.f32.xlu1 %v1683_v56 }
 0x69d   : > { %v1685_v63 = vpop.xlane.xlu0 %1684 }
 0x69e   : > { %v1692_v0 = vmul.f32 0.0625, %v1685_v63 }
 0x69f   : > { %v1687_v1 = vpop.xlane.xlu1 %1686 }
 0x6a0   : > { %v1696_v2 = vadd.f32 1e-05, %v1692_v0  ;;  %v1693_v3 = vmul.f32 0.0625, %v1687_v1 }
 0x6a1   : > { %v1689_v4 = vpop.xlane.xlu0 %1688 }
 0x6a2   : > { %2710 = vrsqrt.f32 %v1696_v2  ;;  %v1697_v5 = vadd.f32 1e-05, %v1693_v3  ;;  %v1694_v6 = vmul.f32 0.0625, %v1689_v4 }
 0x6a3   : > { %v1691_v7 = vpop.xlane.xlu1 %1690 }
 0x6a4   : > { %2712 = vrsqrt.f32 %v1697_v5  ;;  %v1698_v8 = vadd.f32 1e-05, %v1694_v6  ;;  %v1695_v9 = vmul.f32 0.0625, %v1691_v7 }
 0x6a6   : > { %2714 = vrsqrt.f32 %v1698_v8  ;;  %v1699_v11 = vadd.f32 1e-05, %v1695_v9 }
 0x6a8   : > { %2716 = vrsqrt.f32 %v1699_v11 }
 0x6ac   : > { %v2711_v12 = vpop.eup %2710 }
 0x6ad   : > { %v1704_v14 = vmul.f32 %v2711_v12, %v1676_v45 }
 0x6ae   : > { %v2713_v15 = vpop.eup %2712 }
 0x6af   : > { %v1705_v17 = vmul.f32 %v2713_v15, %v1677_v50  ;;  %v1714_v18 = vmul.f32 %v2260_v13, %v1704_v14 }
 0x6b0   : > { %v2715_v19 = vpop.eup %2714 }
 0x6b1   : > { %v1706_v20 = vmul.f32 %v2715_v19, %v1678_v53  ;;  %v1715_v21 = vmul.f32 %v2260_v13, %v1705_v17  ;;  %v1724_v22 = vadd.f32 %v2261_v16, %v1714_v18 }
 0x6b2   : > { %v2717_v23 = vpop.eup %2716 }
 0x6b3   : > { %v1707_v24 = vmul.f32 %v2717_v23, %v1679_v55  ;;  %v1725_v25 = vadd.f32 %v2261_v16, %v1715_v21  ;;  %v1716_v26 = vmul.f32 %v2260_v13, %v1706_v20  ;;  %v1728_v27 = vmax.f32 %v1724_v22, 0.0 }
 0x6b5   : > { %v1729_v28 = vmax.f32 %v1725_v25, 0.0  ;;  %v1717_v29 = vmul.f32 %v2260_v13, %v1707_v24  ;;  %v1726_v30 = vadd.f32 %v2261_v16, %v1716_v26 }
 0x6b7   : > { %v1732_v31 = vpack.c.bf16 %v1729_v28, %v1728_v27  ;;  %v1727_v32 = vadd.f32 %v2261_v16, %v1717_v29  ;;  %v1730_v33 = vmax.f32 %v1726_v30, 0.0 }
 0x6b9   : > { %2490 = vmatprep.mubr.bf16.mxu0 %v1732_v31  ;;  %v1731_v34 = vmax.f32 %v1727_v32, 0.0 }
 0x6bb   : > { %v1733_v35 = vpack.c.bf16 %v1731_v34, %v1730_v33 }
 0x6bd   : > { %2491 = vmatmul.mubr.bf16.vlgmr.msra.gmra.mrb[8].mxu0 %v1733_v35 }
 0x790   : > { %v2492_v37 = vpop.f32.mrb[8].mxu0 }
 0x791   : > { %v1848_v38 = vadd.f32 %v2492_v37, %v2262_v36  ;;  %v1839_v39 = vpop.f32.mrb[9].mxu0 }
 0x792   : > { %v1840_v40 = vadd.f32 %v2262_v36, %v1839_v39  ;;  %v2493_v41 = vpop.f32.mrb[10].mxu0  ;;  %1865 = sbr.rel (%p2271_p9) target bundleno = 1945 (0x799), region = 96 }
 0x793   : > { %v1856_v43 = vadd.f32 %v2718_v42, %v1848_v38  ;;  %v1851_v44 = vadd.f32 %v2493_v41, %v2262_v36  ;;  %v1842_v45 = vpop.f32.mrb[11].mxu0 }
 0x794   : > { %v1854_v47 = vadd.f32 %v2719_v46, %v1840_v40  ;;  %v1843_v48 = vadd.f32 %v2262_v36, %v1842_v45 }
 0x795   : > { %1860 = vst [vmem:[#allocation2 + $0x10] sm:$0xff] %v1856_v43  ;;  %v1857_v50 = vadd.f32 %v2720_v49, %v1851_v44  ;;  %1868 = vst [vmem:[%s3474_s18 + $0x10] sm:$0xff] (!%p2271_p9), %v1856_v43 }
 0x796   : > { %1858 = vst [vmem:[#allocation2] sm:$0xff] %v1854_v47  ;;  %v1855_v52 = vadd.f32 %v2721_v51, %v1843_v48  ;;  %1866 = vst [vmem:[%s3474_s18] sm:$0xff] (!%p2271_p9), %v1854_v47 }
 0x797   : > { %1861 = vst [vmem:[#allocation2 + $0x18] sm:$0xff] %v1857_v50  ;;  %1869 = vst [vmem:[%s3474_s18 + $0x18] sm:$0xff] (!%p2271_p9), %v1857_v50 }
 0x798   : > { %1859 = vst [vmem:[#allocation2 + $0x8] sm:$0xff] %v1855_v52  ;;  %1867 = vst [vmem:[%s3474_s18 + $0x8] sm:$0xff] (!%p2271_p9), %v1855_v52 }
 0x799 PF: > { %s3849_s17 = sld [smem:[#allocation26_spill]]  ;;  %s3850_s23 = sld [smem:[#allocation47_spill]] }
 0x79a   : > { %s1885_s28 = sshll.u32 %s3474_s18, 4  ;;  %s1871_s14 = scalar_lea.sflag [#allocation8], %s3404_s11  ;;  %s3664_s28 = int_to_ptr.vmem [resolvable:$true] %s1885_s28 }
 0x79b   : > { %s2852_s9 = scalar_lea.vmem %s3664_s28, 512  ;;  %p3852_p10 = scmp.ne.s32.totalorder %s3807_s25, 0 }
 0x79c   : > { %p2853_p5 = scmp.ne.s32.totalorder %s3664_s28, %s2852_s9  ;;  %s2996_s22 = smov [#allocation14]  }
 0x79d   : > { %s2856_s3 = sshll.u32 %s2996_s22, 4  ;;  %s2857_s3 = int_to_ptr.vmem [resolvable:$false] %s2856_s3 }
 0x79e   : > { %p2854_p6 = pnand %p2853_p5, %p3852_p10  ;;  %s2858_s13 = scalar_lea.vmem %s2857_s3, 1024 }
 0x79f   : > { %s2283_s29 = sshll.u32 %s3849_s17, 9  ;;  %s3851_s21 = smov %s3850_s23 }
 0x7a0   : > { %s3661_s15 = scalar_lea.hbm %s3850_s23, %s2283_s29  ;;  %p2855_p3 = pneg %p2854_p6 }
 0x7a1   : > { %p2859_p13 = scmp.lt.s32.totalorder %s3664_s28, %s2857_s3  ;;  %p2860_p2 = scmp.lt.s32.totalorder %s2858_s13, %s2852_s9 }
 0x7a3   : > { %p2861_p0 = por %p2860_p2, %p2859_p13 }
 0x7a5   : > { %p2862_p7 = pnand %p2861_p0, %p2855_p3 }
 0x7a7   : > { %2865 = shalt.err (!%p2862_p7)
}
 0x7a8   : > { %s2866_s18 = scalar_lea.hbm %s3661_s15, 512  ;;  %s2870_s1 = scalar_lea.hbm %s3851_s21, 1024 }
 0x7a9   : > { %p2867_p12 = scmp.ne.s32.totalorder %s3661_s15, %s2866_s18  ;;  %p2871_p4 = scmp.lt.u32.totalorder %s3661_s15, %s3851_s21 }
 0x7aa   : > { %p2872_p11 = scmp.lt.u32.totalorder %s2870_s1, %s2866_s18  ;;  %p2874_p5 = scmp.lt.u32.totalorder %s2866_s18, %s3661_s15 }
 0x7ab   : > { %p2868_p8 = pnand %p2867_p12, %p3852_p10 }
 0x7ac   : > { %p2873_p9 = por %p2872_p11, %p2871_p4 }
 0x7ad   : > { %p2869_p1 = pneg %p2868_p8 }
 0x7ae   : > { %p2875_p6 = por %p2874_p5, %p2873_p9 }
 0x7b0   : > { %p2876_p3 = pnand %p2875_p6, %p2869_p1 }
 0x7b2   : > { %2879 = shalt.err (!%p2876_p3)
}
 0x7b3   : > { %s2997_s6 = smov 128   ;;  %s2998_s27 = smov 8  }
 0x7b4   : > { %2521 = dma.vmem_to_hbm [thread:$0]  (%p3852_p10), %s3664_s28, 512, %s3661_s15, %s1871_s14, %s2997_s6, %s2997_s6, %s2998_s27  }
 0x7b5 PF: > { %s3853_s26 = sld [smem:[#allocation22_spill]]  ;;  %s3854_s12 = sld [smem:[#allocation33_spill]] }
 0x7b6   : > { %p2541_p13 = scmp.ge.s32.totalorder %s2984_s16, 2 }
 0x7bb   : > { %s1900_s24 = sand.u32 1, %s3853_s26   ;;  %p3855_p2 = scmp.ne.s32.totalorder %s3854_s12, 0 }
 0x7bc   : > { %s1901_s8 = scalar_lea.sflag [#allocation8], %s1900_s24 }
 0x7bd   : > { %p2537_p0 = pnand %p2541_p13, %p3855_p2 }
 0x7bf   : > { %2939 = dma.done.wait (!%p2537_p0), %s1901_s8, 512  }
 0x7c0   : > { %2941 = vsyncadd (!%p2537_p0), %s1901_s8, 4294966784  ;;  %s40_s16 = sadd.s32 1, %s2984_s16   ;;  %s3856_s23 = sld [smem:[#allocation20_spill]] }
 0x7c1   : > { %p37_p7 = scmp.ge.s32.totalorder %s40_s16, 10   ;;  %s3857_s24 = sld [smem:[#allocation21_spill]] }
 0x7c2   : > { %s3858_s25 = sld [smem:[#allocation30_spill]]  ;;  %s3859_s26 = sld [smem:[#allocation23_spill]] }
 0x7c3   : > { %s3860_s0 = sld [smem:[#allocation24_spill]]  ;;  %s3861_s27 = sld [smem:[#allocation32_spill]] }
 0x7c4   : > { %s3862_s28 = sld [smem:[#allocation27_spill]]  ;;  %s3863_s29 = sld [smem:[#allocation28_spill]] }
 0x7c5   : > { %s3864_s30 = sld [smem:[#allocation29_spill]]  ;;  %s3865_s15 = sld [smem:[#allocation31_spill]] }
 0x7c6   :  { %39 = sbr.rel (!%p37_p7) target bundleno = 34 (0x22), region = 198 }
 0x7cd   :  { %1906 = vsyncpa [#allocation7], 1 }
 0x7ce   :  { %1908 = vsyncpa [#allocation7 + $0x1], 1 }
 0x7cf   :  { %1909 = vsyncpa [#allocation10], 1 }
 0x7d0   :  { %1911 = vsyncpa [#allocation10 + $0x1], 1 }
 0x7d1   :  { %1912 = vsyncpa [#allocation13], 1 }
 0x7d2   :  { %1914 = vsyncpa [#allocation13 + $0x1], 1 }
 0x7d3   :  { %1915 = vsyncpa [#allocation8], 1 }
 0x7d4   :  { %1917 = vsyncpa [#allocation8 + $0x1], 1 }

</bundles_post_ra>
